<compile_context>
chip_gen: v7x
topology: tpu7x:2x2x1
jax: 0.10.0
libtpu: 0.0.40
codegen_flags: <defaults>
</compile_context>

<pallas_src>
import functools

import jax
import jax.numpy as jnp
from jax import lax
from jax.experimental import pallas as pl
from jax.experimental.pallas import tpu as pltpu

TARGET = True  # mirrors the module-global `target` referenced inside Classifier.forward

# ----------------------------- configuration ------------------------------ #
BATCH = 2
VOCAB = 50
MAXLEN = 16          # sequence length == Conv1d in_channels
ASPECT_LEN = 4
WORD_DIM = 32        # embedding dim == Conv1d spatial length
HEADS = 4
HEAD_DIM = WORD_DIM // HEADS
NUM_FILTERS = 8
FILTER_SIZES = (2, 3)
DROPOUT_PROB = 0.1   # dropout == identity at inference time

R_PER_H = MAXLEN // HEADS
N_EXP = HEADS * VOCAB          # rows of the scramble-expanded gather tables
ROWS_Q = HEADS * MAXLEN        # 64 scrambled (head, row) score rows per batch
ROWS_KV = HEADS * ASPECT_LEN   # 16 (head, aspect) key/value rows per batch
NEG_BIG = 1.0e30

# The closed forms used for the torch raw-reshape "scrambles" rely on these relations.
assert WORD_DIM == HEADS * HEAD_DIM
assert MAXLEN % HEADS == 0
assert ASPECT_LEN == HEADS


# ------------------------------ fused kernel ------------------------------- #
def _fused_classifier_kernel(idxq_ref, idxkv_ref, mrow_ref, sel_ref, slab_ref,
                             out_ref, *, off):
    f32 = jnp.float32
    rows_q = idxq_ref.shape[0]     # nb * 64
    rows_kv = idxkv_ref.shape[0]   # nb * 16

    def cget(name):                # static slice of the packed constant slab
        r0, nr, nc = off[name]
        return slab_ref[r0:r0 + nr, 0:nc]

    # -- 1. scrambled Q and K|V gathers: one-hot @ tables that already contain the
    #       Linear projections, 1/sqrt(d) scale, biases and the raw-reshape scrambles.
    iot_q = lax.broadcasted_iota(jnp.int32, (rows_q, N_EXP), 1)
    onehot_q = (idxq_ref[...] == iot_q).astype(f32)
    q_scr = jnp.dot(onehot_q, cget('qtab'), preferred_element_type=f32)        # (rq, 8)

    iot_kv = lax.broadcasted_iota(jnp.int32, (rows_kv, N_EXP), 1)
    onehot_kv = (idxkv_ref[...] == iot_kv).astype(f32)
    kv = jnp.dot(onehot_kv, cget('kvtab'), preferred_element_type=f32)         # (rkv, 16)
    k_rows = kv[:, 0:HEAD_DIM]
    v_rows = kv[:, HEAD_DIM:2 * HEAD_DIM]
    # TODO(synk): self.dropout is a no-op here (inference mode); training-time
    # stochastic masking is not implemented.

    # -- 2. all (batch, head) attention blocks in two matmuls -------------------- #
    s = lax.dot_general(q_scr, k_rows, (((1,), (1,)), ((), ())),
                        preferred_element_type=f32)                            # (rq, rkv)
    blk = cget('blk')                              # 1.0 on the (batch, head) diagonal blocks
    keep = blk * mrow_ref[...]                     # token mask; masked_fill value is 0.0
    s = s * keep + (blk - 1.0) * NEG_BIG           # off-block scores -> -inf for softmax
    s = s - jnp.max(s, axis=-1, keepdims=True)
    e = jnp.exp(s)
    attn = e * pl.reciprocal(jnp.sum(e, axis=-1, keepdims=True), approx=False)
    ctx = jnp.dot(attn, v_rows, preferred_element_type=f32)                    # (rq, 8)

    # -- 3. un-scramble straight into the conv layout with two constant matmuls -- #
    ctx_w = jnp.dot(ctx, cget('tile8'), preferred_element_type=f32) * cget('ctxmask')
    x0 = jnp.dot(sel_ref[...], ctx_w, preferred_element_type=f32)              # (rtok, 32)

    # lane-aligned shifted copies for the conv taps (shift matrices instead of
    # unaligned sub-vreg slices)
    xs = [x0]
    for kk in range(1, max(FILTER_SIZES)):
        xs.append(jnp.dot(x0, cget(f'shift{kk}'), preferred_element_type=f32))

    # -- 4. both Conv1d branches (block-diag over batch) + ReLU + pool + final fc - #
    logit = cget('fcb')                                                        # (nb, 1)
    for i, fs in enumerate(FILTER_SIZES):
        acc = cget(f'cb{i}')
        for kk in range(fs):
            acc = acc + jnp.dot(cget(f'w{i}{kk}'), xs[kk], preferred_element_type=f32)
        acc = jnp.maximum(acc, 0.0) * cget(f'cmask{i}')    # mask invalid tail columns
        pooled = jnp.max(acc, axis=-1, keepdims=True)      # (nb*NUM_FILTERS, 1)
        logit = logit + jnp.dot(cget(f'f{i}'), pooled, preferred_element_type=f32)
    out_ref[0] = logit


# ----------------- one-time packing of kernel-ready constants --------------- #
def _pack_slab(items, width):
    """Vertically pack small 2-D f32 constants into one lane-dense slab so the kernel
    takes a single weight operand (one DMA instead of ~16 small ones)."""
    off, parts, r = {}, [], 0
    for name, arr in items:
        a = jnp.asarray(arr, jnp.float32)
        nr, nc = int(a.shape[0]), int(a.shape[1])
        assert nc <= width, (name, a.shape)
        if nc < width:
            a = jnp.concatenate([a, jnp.zeros((nr, width - nc), jnp.float32)], axis=1)
        parts.append(a)
        off[name] = (r, nr, nc)
        r += nr
        pad = (-r) % 8                    # keep every block 8-row (sublane) aligned
        if pad:
            parts.append(jnp.zeros((pad, width), jnp.float32))
            r += pad
    return jnp.concatenate(parts, axis=0), off


def build_constants(p, nb):
    """Fold projections/scale/biases/scrambles into gather tables, build the constant
    masks / selection / shift / block-diagonal matrices for `nb` batch rows per block."""
    f32 = jnp.float32
    emb = jnp.asarray(p['emb'], f32)
    inv_sqrt = 1.0 / (WORD_DIM ** 0.5)
    eye_h = jnp.eye(HEADS, dtype=f32)

    def head_blockdiag(w):   # per-head nn.Linear applied to all 4 chunks at once
        return jnp.kron(eye_h, jnp.asarray(w, f32).T)

    qtab_full = emb @ (head_blockdiag(p['Wq']) * inv_sqrt) + jnp.tile(p['bq'], HEADS) * inv_sqrt
    ktab_full = emb @ head_blockdiag(p['Wk']) + jnp.tile(p['bk'], HEADS)
    vtab_full = emb @ head_blockdiag(p['Wv']) + jnp.tile(p['bv'], HEADS)

    # fold torch's raw row-major reshape "scrambles" into expanded gather tables
    qtab = jnp.concatenate([qtab_full[:, c * HEAD_DIM:(c + 1) * HEAD_DIM]
                            for c in range(HEADS)], axis=0)                    # (4V, 8)
    kperm = [[d * ASPECT_LEN + a for d in range(HEAD_DIM)] for a in range(ASPECT_LEN)]
    ktab = jnp.concatenate([ktab_full[:, jnp.array(kperm[a])]
                            for a in range(ASPECT_LEN)], axis=0)               # (4V, 8)
    vtab = jnp.concatenate([vtab_full[:, a * HEAD_DIM:(a + 1) * HEAD_DIM]
                            for a in range(ASPECT_LEN)], axis=0)               # (4V, 8)
    kvtab = jnp.concatenate([ktab, vtab], axis=1)                              # (4V, 16)

    rq, rkv, rtok = nb * ROWS_Q, nb * ROWS_KV, nb * MAXLEN
    row = jnp.arange(rq)
    colk = jnp.arange(rkv)
    colw = jnp.arange(WORD_DIM)
    # (batch, head) block-diagonal mask for the fused score matrix
    blk = ((row[:, None] // MAXLEN) == (colk[None, :] // ASPECT_LEN)).astype(f32)
    # per-ctx-row placement of its 8 values into the correct word_dim column chunk
    ctxmask = ((colw[None, :] // HEAD_DIM) == (row[:, None] % HEADS)).astype(f32)
    tile8 = ((colw[None, :] % HEAD_DIM) == jnp.arange(HEAD_DIM)[:, None]).astype(f32)
    # selection matmul that sums the 4 chunk-placed ctx rows of each output token
    prow = ((row // ROWS_Q) * MAXLEN + R_PER_H * ((row // MAXLEN) % HEADS)
            + (row // HEADS) % R_PER_H)
    sel = (jnp.arange(rtok)[:, None] == prow[None, :]).astype(f32)             # (rtok, rq)

    eye_b = jnp.eye(nb, dtype=f32)
    items = [('qtab', qtab), ('kvtab', kvtab), ('blk', blk),
             ('ctxmask', ctxmask), ('tile8', tile8)]
    for kk in range(1, max(FILTER_SIZES)):
        items.append((f'shift{kk}', jnp.eye(WORD_DIM, k=-kk, dtype=f32)))
    for i, fs in enumerate(FILTER_SIZES):
        w = jnp.asarray(p['conv_w'][i], f32)                                   # (8, 16, fs)
        for kk in range(fs):
            items.append((f'w{i}{kk}', jnp.kron(eye_b, w[:, :, kk])))          # (8nb, 16nb)
        items.append((f'cb{i}', jnp.tile(jnp.asarray(p['conv_b'][i], f32), nb)
                      .reshape(nb * NUM_FILTERS, 1)))
        items.append((f'cmask{i}', (colw < (WORD_DIM - fs + 1)).astype(f32)
                      .reshape(1, WORD_DIM)))
        items.append((f'f{i}', jnp.kron(
            eye_b, jnp.asarray(p['fc_w'], f32)[:, i * NUM_FILTERS:(i + 1) * NUM_FILTERS])))
    items.append(('fcb', jnp.full((nb, 1), jnp.asarray(p['fc_b'], f32)[0])))

    slab, off = _pack_slab(items, width=WORD_DIM)
    return slab, sel, off


def _num_tensorcore_blocks(batch=BATCH):
    """Split the batch over TensorCores only on multi-TC chips (v7x); single-TC chips
    (v5e/v6e) keep one fused grid step to avoid per-step overhead."""
    try:
        kind = jax.devices()[0].device_kind.lower()
    except Exception:
        return 1
    if 'v7' in kind or '7x' in kind:
        return min(2, batch)
    return 1


def make_classifier_forward(params, n_blocks=1):
    assert BATCH % n_blocks == 0
    nb = BATCH // n_blocks
    slab, sel, off = build_constants(params, nb)
    kern = functools.partial(_fused_classifier_kernel, off=off)
    rq, rkv = nb * ROWS_Q, nb * ROWS_KV

    call = pl.pallas_call(
        kern,
        out_shape=jax.ShapeDtypeStruct((n_blocks, nb, 1), jnp.float32),
        grid=(n_blocks,),
        in_specs=[
            pl.BlockSpec((rq, 1), lambda i: (i, 0)),      # scrambled Q gather indices
            pl.BlockSpec((rkv, 1), lambda i: (i, 0)),     # scrambled K/V gather indices
            pl.BlockSpec((rq, 1), lambda i: (i, 0)),      # token mask per score row
            pl.BlockSpec(sel.shape, lambda i: (0, 0)),    # un-scramble selection (constant)
            pl.BlockSpec(slab.shape, lambda i: (0, 0)),   # packed weight slab (one DMA)
        ],
        out_specs=pl.BlockSpec((1, nb, 1), lambda i: (i, 0, 0)),
        compiler_params=pltpu.CompilerParams(
            dimension_semantics=("parallel",) if n_blocks > 1 else ("arbitrary",)),
    )

    @jax.jit
    def forward(inputs, masks, aspects):
        b = inputs.shape[0]
        assert b == BATCH
        inputs = inputs.astype(jnp.int32)
        aspects = aspects.astype(jnp.int32)
        # gather indices with torch's raw-reshape scrambles folded into the index math
        r = jnp.arange(MAXLEN)
        h = jnp.arange(HEADS)
        tok_pos = R_PER_H * h[:, None] + r[None, :] // HEADS           # (H, M)
        chunk = (r % HEADS)[None, None, :]                             # (1, 1, M)
        idxq = (chunk * VOCAB + inputs[:, tok_pos]).reshape(b * ROWS_Q, 1)
        asp_off = jnp.arange(ASPECT_LEN)[None, None, :]
        idxkv = (asp_off * VOCAB + aspects[:, :, None]).reshape(b * ROWS_KV, 1)
        mrow = jnp.broadcast_to((masks != 0).astype(jnp.float32)[:, None, :],
                                (b, HEADS, MAXLEN)).reshape(b * ROWS_Q, 1)
        out = call(idxq, idxkv, mrow, sel, slab)
        return out.reshape(b, 1)

    return forward


# --------------------------- pure-JAX reference ---------------------------- #
def _ref_conv1d(x, w, b):
    fs = w.shape[-1]
    l_out = x.shape[-1] - fs + 1
    cols = jnp.stack([x[:, :, kk:kk + l_out] for kk in range(fs)], axis=-1)
    return jnp.einsum('bclk,ock->bol', cols, w) + b[None, :, None]


def reference_forward(params, inputs, masks, aspects):
    B = inputs.shape[0]
    emb = params['emb']
    we = emb[inputs]
    te = emb[aspects]
    Q = jnp.matmul(we.reshape(B, -1, HEADS, HEAD_DIM), params['Wq'].T) + params['bq']
    K = jnp.matmul(te.reshape(B, -1, HEADS, HEAD_DIM), params['Wk'].T) + params['bk']
    V = jnp.matmul(te.reshape(B, -1, HEADS, HEAD_DIM), params['Wv'].T) + params['bv']
    dot = jnp.matmul(Q.reshape(B, HEADS, -1, HEAD_DIM),
                     K.reshape(B, HEADS, HEAD_DIM, -1))
    m = masks.reshape(B, -1, Q.shape[1], 1).astype(jnp.float32)
    dot = jnp.where(m == 0.0, 0.0, dot)
    a = jax.nn.softmax(dot / (WORD_DIM ** 0.5), axis=-1)
    hh = jnp.matmul(a.reshape(B, HEADS, -1, te.shape[1]),
                    V.reshape(B, HEADS, -1, HEAD_DIM))
    wemb = hh.reshape(B, -1, HEADS * HEAD_DIM)
    outs = []
    for i, fs in enumerate(FILTER_SIZES):
        y = _ref_conv1d(wemb, params['conv_w'][i], params['conv_b'][i])
        y = jnp.maximum(y, 0.0)
        outs.append(jnp.max(y, axis=-1))
    feats = jnp.concatenate(outs, axis=-1)
    return jnp.matmul(feats, params['fc_w'].T) + params['fc_b']


# --------------------------------- params ----------------------------------- #
def init_params(key):
    ks = jax.random.split(key, 16)
    p = {}
    p['emb'] = 0.1 * jax.random.normal(ks[0], (VOCAB, WORD_DIM), jnp.float32)
    p['Wq'] = 0.2 * jax.random.normal(ks[1], (HEAD_DIM, HEAD_DIM), jnp.float32)
    p['bq'] = 0.05 * jax.random.normal(ks[2], (HEAD_DIM,), jnp.float32)
    p['Wk'] = 0.2 * jax.random.normal(ks[3], (HEAD_DIM, HEAD_DIM), jnp.float32)
    p['bk'] = 0.05 * jax.random.normal(ks[4], (HEAD_DIM,), jnp.float32)
    p['Wv'] = 0.2 * jax.random.normal(ks[5], (HEAD_DIM, HEAD_DIM), jnp.float32)
    p['bv'] = 0.05 * jax.random.normal(ks[6], (HEAD_DIM,), jnp.float32)
    p['conv_w'] = [0.2 * jax.random.normal(ks[7 + i], (NUM_FILTERS, MAXLEN, fs), jnp.float32)
                   for i, fs in enumerate(FILTER_SIZES)]
    p['conv_b'] = [0.05 * jax.random.normal(ks[9 + i], (NUM_FILTERS,), jnp.float32)
                   for i in range(len(FILTER_SIZES))]
    p['fc_w'] = 0.2 * jax.random.normal(ks[11], (1, len(FILTER_SIZES) * NUM_FILTERS), jnp.float32)
    p['fc_b'] = 0.05 * jax.random.normal(ks[12], (1,), jnp.float32)
    return p


if __name__ == "__main__":
    key = jax.random.PRNGKey(0)
    kseed, ki, ka, km = jax.random.split(key, 4)
    params = init_params(kseed)

    inputs = jax.random.randint(ki, (BATCH, MAXLEN), 0, VOCAB, dtype=jnp.int32)
    aspects = jax.random.randint(ka, (BATCH, ASPECT_LEN), 0, VOCAB, dtype=jnp.int32)
    masks = (jax.random.uniform(km, (BATCH, MAXLEN)) > 0.2).astype(jnp.int32)

    ref = jax.block_until_ready(reference_forward(params, inputs, masks, aspects))

    n_blocks = _num_tensorcore_blocks()
    fwd = make_classifier_forward(params, n_blocks=n_blocks)
    out = jax.block_until_ready(fwd(inputs, masks, aspects))
    assert out.shape == (BATCH, 1), out.shape
    assert jnp.allclose(out, ref, rtol=1e-2, atol=1e-3), (out, ref)

    # Also exercise the alternate grid layout (per-batch split used on 2-TensorCore
    # chips vs. the single fused step used on 1-TC chips) so both paths are validated
    # regardless of which TPU generation runs this script.
    alt_blocks = BATCH if n_blocks == 1 else 1
    out_alt = jax.block_until_ready(
        make_classifier_forward(params, n_blocks=alt_blocks)(inputs, masks, aspects))
    assert jnp.allclose(out_alt, ref, rtol=1e-2, atol=1e-3), (out_alt, ref)

    print("KERNEL_OK")
</pallas_src>

<mosaic_0001>
module attributes {stable_mosaic.version = 11 : i64} {
  func.func @_fused_classifier_kernel(%arg0: i32, %arg1: memref<128x1xi32, #tpu.memory_space<vmem>>, %arg2: memref<32x1xi32, #tpu.memory_space<vmem>>, %arg3: memref<128x1xf32, #tpu.memory_space<vmem>>, %arg4: memref<32x128xf32, #tpu.memory_space<vmem>>, %arg5: memref<880x32xf32, #tpu.memory_space<vmem>>, %arg6: memref<1x2x1xf32, #tpu.memory_space<vmem>>) attributes {dimension_semantics = [#tpu.dimension_semantics<arbitrary>], iteration_bounds = array<i64: 1>, scalar_prefetch = 0 : i64, scratch_operands = 0 : i64, tpu.core_type = #tpu.core_type<tc>, window_params = [{transform_indices = @transform_0, window_bounds = array<i64: 128, 1>}, {transform_indices = @transform_1, window_bounds = array<i64: 32, 1>}, {transform_indices = @transform_2, window_bounds = array<i64: 128, 1>}, {pipeline_mode = #tpu.pipeline_mode<synchronous>, transform_indices = @transform_3, window_bounds = array<i64: 32, 128>}, {pipeline_mode = #tpu.pipeline_mode<synchronous>, transform_indices = @transform_4, window_bounds = array<i64: 880, 32>}, {transform_indices = @transform_5, window_bounds = array<i64: 1, 2, 1>}]} {
    %0 = tpu.iota {dimensions = array<i32: 1>} : vector<128x200xi32>
    %c0 = arith.constant 0 : index
    %c0_0 = arith.constant 0 : index
    %1 = vector.load %arg1[%c0, %c0_0] : memref<128x1xi32, #tpu.memory_space<vmem>>, vector<128x1xi32>
    %2 = vector.broadcast %1 : vector<128x1xi32> to vector<128x200xi32>
    %3 = arith.cmpi eq, %2, %0 : vector<128x200xi32>
    %4 = arith.extui %3 : vector<128x200xi1> to vector<128x200xi32>
    %5 = arith.sitofp %4 : vector<128x200xi32> to vector<128x200xf32>
    %c0_1 = arith.constant 0 : index
    %c0_2 = arith.constant 0 : index
    %6 = vector.load %arg5[%c0_1, %c0_2] : memref<880x32xf32, #tpu.memory_space<vmem>>, vector<200x8xf32>
    %cst = arith.constant dense<0.000000e+00> : vector<128x8xf32>
    %7 = tpu.matmul %5, %6, %cst {dimension_numbers = #tpu.dot_dimension_numbers<[1], [0], [0], [1], [0, 0, 1, 1], [], []>} : vector<128x200xf32>, vector<200x8xf32>, vector<128x8xf32> -> vector<128x8xf32>
    %8 = tpu.iota {dimensions = array<i32: 1>} : vector<32x200xi32>
    %c0_3 = arith.constant 0 : index
    %c0_4 = arith.constant 0 : index
    %9 = vector.load %arg2[%c0_3, %c0_4] : memref<32x1xi32, #tpu.memory_space<vmem>>, vector<32x1xi32>
    %10 = vector.broadcast %9 : vector<32x1xi32> to vector<32x200xi32>
    %11 = arith.cmpi eq, %10, %8 : vector<32x200xi32>
    %12 = arith.extui %11 : vector<32x200xi1> to vector<32x200xi32>
    %13 = arith.sitofp %12 : vector<32x200xi32> to vector<32x200xf32>
    %c200 = arith.constant 200 : index
    %c0_5 = arith.constant 0 : index
    %14 = vector.load %arg5[%c200, %c0_5] : memref<880x32xf32, #tpu.memory_space<vmem>>, vector<200x16xf32>
    %cst_6 = arith.constant dense<0.000000e+00> : vector<32x16xf32>
    %15 = tpu.matmul %13, %14, %cst_6 {dimension_numbers = #tpu.dot_dimension_numbers<[1], [0], [0], [1], [0, 0, 1, 1], [], []>} : vector<32x200xf32>, vector<200x16xf32>, vector<32x16xf32> -> vector<32x16xf32>
    %16 = vector.extract_strided_slice %15 {offsets = [0, 0], sizes = [32, 8], strides = [1, 1]} : vector<32x16xf32> to vector<32x8xf32>
    %17 = vector.extract_strided_slice %15 {offsets = [0, 8], sizes = [32, 8], strides = [1, 1]} : vector<32x16xf32> to vector<32x8xf32>
    %cst_7 = arith.constant dense<0.000000e+00> : vector<128x32xf32>
    %18 = tpu.matmul %7, %16, %cst_7 {dimension_numbers = #tpu.dot_dimension_numbers<[1], [1], [0], [0], [0, 0, 1, 0], [], []>} : vector<128x8xf32>, vector<32x8xf32>, vector<128x32xf32> -> vector<128x32xf32>
    %c400 = arith.constant 400 : index
    %c0_8 = arith.constant 0 : index
    %19 = vector.load %arg5[%c400, %c0_8] : memref<880x32xf32, #tpu.memory_space<vmem>>, vector<128x32xf32>
    %c0_9 = arith.constant 0 : index
    %c0_10 = arith.constant 0 : index
    %20 = vector.load %arg3[%c0_9, %c0_10] : memref<128x1xf32, #tpu.memory_space<vmem>>, vector<128x1xf32>
    %21 = vector.broadcast %20 : vector<128x1xf32> to vector<128x32xf32>
    %22 = arith.mulf %19, %21 : vector<128x32xf32>
    %23 = arith.mulf %18, %22 : vector<128x32xf32>
    %cst_11 = arith.constant 1.000000e+00 : f32
    %24 = vector.broadcast %cst_11 : f32 to vector<128x32xf32>
    %25 = arith.subf %19, %24 : vector<128x32xf32>
    %cst_12 = arith.constant 1.000000e+30 : f32
    %26 = vector.broadcast %cst_12 : f32 to vector<128x32xf32>
    %27 = arith.mulf %25, %26 : vector<128x32xf32>
    %28 = arith.addf %23, %27 : vector<128x32xf32>
    %cst_13 = arith.constant dense<0xFF800000> : vector<128xf32>
    %29 = vector.multi_reduction <maximumf>, %28, %cst_13 [1] : vector<128x32xf32> to vector<128xf32>
    %30 = vector.shape_cast %29 : vector<128xf32> to vector<128x1xf32>
    %31 = vector.broadcast %30 : vector<128x1xf32> to vector<128x32xf32>
    %32 = arith.subf %28, %31 : vector<128x32xf32>
    %33 = math.exp %32 : vector<128x32xf32>
    %cst_14 = arith.constant dense<0.000000e+00> : vector<128xf32>
    %34 = vector.multi_reduction <add>, %33, %cst_14 [1] : vector<128x32xf32> to vector<128xf32>
    %35 = vector.shape_cast %34 : vector<128xf32> to vector<128x1xf32>
    %36 = tpu.reciprocal %35 : vector<128x1xf32> -> vector<128x1xf32>
    %37 = vector.broadcast %36 : vector<128x1xf32> to vector<128x32xf32>
    %38 = arith.mulf %33, %37 : vector<128x32xf32>
    %cst_15 = arith.constant dense<0.000000e+00> : vector<128x8xf32>
    %39 = tpu.matmul %38, %17, %cst_15 {dimension_numbers = #tpu.dot_dimension_numbers<[1], [0], [0], [1], [0, 0, 1, 1], [], []>} : vector<128x32xf32>, vector<32x8xf32>, vector<128x8xf32> -> vector<128x8xf32>
    %c656 = arith.constant 656 : index
    %c0_16 = arith.constant 0 : index
    %40 = vector.load %arg5[%c656, %c0_16] : memref<880x32xf32, #tpu.memory_space<vmem>>, vector<8x32xf32>
    %cst_17 = arith.constant dense<0.000000e+00> : vector<128x32xf32>
    %41 = tpu.matmul %39, %40, %cst_17 {dimension_numbers = #tpu.dot_dimension_numbers<[1], [0], [0], [1], [0, 0, 1, 1], [], []>} : vector<128x8xf32>, vector<8x32xf32>, vector<128x32xf32> -> vector<128x32xf32>
    %c528 = arith.constant 528 : index
    %c0_18 = arith.constant 0 : index
    %42 = vector.load %arg5[%c528, %c0_18] : memref<880x32xf32, #tpu.memory_space<vmem>>, vector<128x32xf32>
    %43 = arith.mulf %41, %42 : vector<128x32xf32>
    %c0_19 = arith.constant 0 : index
    %c0_20 = arith.constant 0 : index
    %44 = vector.load %arg4[%c0_19, %c0_20] : memref<32x128xf32, #tpu.memory_space<vmem>>, vector<32x128xf32>
    %cst_21 = arith.constant dense<0.000000e+00> : vector<32x32xf32>
    %45 = tpu.matmul %44, %43, %cst_21 {dimension_numbers = #tpu.dot_dimension_numbers<[1], [0], [0], [1], [0, 0, 1, 1], [], []>} : vector<32x128xf32>, vector<128x32xf32>, vector<32x32xf32> -> vector<32x32xf32>
    %c664 = arith.constant 664 : index
    %c0_22 = arith.constant 0 : index
    %46 = vector.load %arg5[%c664, %c0_22] : memref<880x32xf32, #tpu.memory_space<vmem>>, vector<32x32xf32>
    %cst_23 = arith.constant dense<0.000000e+00> : vector<32x32xf32>
    %47 = tpu.matmul %45, %46, %cst_23 {dimension_numbers = #tpu.dot_dimension_numbers<[1], [0], [0], [1], [0, 0, 1, 1], [], []>} : vector<32x32xf32>, vector<32x32xf32>, vector<32x32xf32> -> vector<32x32xf32>
    %c696 = arith.constant 696 : index
    %c0_24 = arith.constant 0 : index
    %48 = vector.load %arg5[%c696, %c0_24] : memref<880x32xf32, #tpu.memory_space<vmem>>, vector<32x32xf32>
    %cst_25 = arith.constant dense<0.000000e+00> : vector<32x32xf32>
    %49 = tpu.matmul %45, %48, %cst_25 {dimension_numbers = #tpu.dot_dimension_numbers<[1], [0], [0], [1], [0, 0, 1, 1], [], []>} : vector<32x32xf32>, vector<32x32xf32>, vector<32x32xf32> -> vector<32x32xf32>
    %c872 = arith.constant 872 : index
    %c0_26 = arith.constant 0 : index
    %50 = vector.load %arg5[%c872, %c0_26] : memref<880x32xf32, #tpu.memory_space<vmem>>, vector<2x1xf32>
    %c760 = arith.constant 760 : index
    %c0_27 = arith.constant 0 : index
    %51 = vector.load %arg5[%c760, %c0_27] : memref<880x32xf32, #tpu.memory_space<vmem>>, vector<16x1xf32>
    %c728 = arith.constant 728 : index
    %c0_28 = arith.constant 0 : index
    %52 = vector.load %arg5[%c728, %c0_28] : memref<880x32xf32, #tpu.memory_space<vmem>>, vector<16x32xf32>
    %cst_29 = arith.constant dense<0.000000e+00> : vector<16x32xf32>
    %53 = tpu.matmul %52, %45, %cst_29 {dimension_numbers = #tpu.dot_dimension_numbers<[1], [0], [0], [1], [0, 0, 1, 1], [], []>} : vector<16x32xf32>, vector<32x32xf32>, vector<16x32xf32> -> vector<16x32xf32>
    %54 = vector.broadcast %51 : vector<16x1xf32> to vector<16x32xf32>
    %55 = arith.addf %54, %53 : vector<16x32xf32>
    %c744 = arith.constant 744 : index
    %c0_30 = arith.constant 0 : index
    %56 = vector.load %arg5[%c744, %c0_30] : memref<880x32xf32, #tpu.memory_space<vmem>>, vector<16x32xf32>
    %cst_31 = arith.constant dense<0.000000e+00> : vector<16x32xf32>
    %57 = tpu.matmul %56, %47, %cst_31 {dimension_numbers = #tpu.dot_dimension_numbers<[1], [0], [0], [1], [0, 0, 1, 1], [], []>} : vector<16x32xf32>, vector<32x32xf32>, vector<16x32xf32> -> vector<16x32xf32>
    %58 = arith.addf %55, %57 : vector<16x32xf32>
    %cst_32 = arith.constant 0.000000e+00 : f32
    %59 = vector.broadcast %cst_32 : f32 to vector<16x32xf32>
    %60 = arith.maximumf %58, %59 : vector<16x32xf32>
    %c776 = arith.constant 776 : index
    %c0_33 = arith.constant 0 : index
    %61 = vector.load %arg5[%c776, %c0_33] : memref<880x32xf32, #tpu.memory_space<vmem>>, vector<1x32xf32>
    %62 = vector.broadcast %61 : vector<1x32xf32> to vector<16x32xf32>
    %63 = arith.mulf %60, %62 : vector<16x32xf32>
    %cst_34 = arith.constant dense<0xFF800000> : vector<16xf32>
    %64 = vector.multi_reduction <maximumf>, %63, %cst_34 [1] : vector<16x32xf32> to vector<16xf32>
    %65 = vector.shape_cast %64 : vector<16xf32> to vector<16x1xf32>
    %c784 = arith.constant 784 : index
    %c0_35 = arith.constant 0 : index
    %66 = vector.load %arg5[%c784, %c0_35] : memref<880x32xf32, #tpu.memory_space<vmem>>, vector<2x16xf32>
    %cst_36 = arith.constant dense<0.000000e+00> : vector<2x1xf32>
    %67 = tpu.matmul %66, %65, %cst_36 {dimension_numbers = #tpu.dot_dimension_numbers<[1], [0], [0], [1], [0, 0, 1, 1], [], []>} : vector<2x16xf32>, vector<16x1xf32>, vector<2x1xf32> -> vector<2x1xf32>
    %68 = arith.addf %50, %67 : vector<2x1xf32>
    %c840 = arith.constant 840 : index
    %c0_37 = arith.constant 0 : index
    %69 = vector.load %arg5[%c840, %c0_37] : memref<880x32xf32, #tpu.memory_space<vmem>>, vector<16x1xf32>
    %c792 = arith.constant 792 : index
    %c0_38 = arith.constant 0 : index
    %70 = vector.load %arg5[%c792, %c0_38] : memref<880x32xf32, #tpu.memory_space<vmem>>, vector<16x32xf32>
    %cst_39 = arith.constant dense<0.000000e+00> : vector<16x32xf32>
    %71 = tpu.matmul %70, %45, %cst_39 {dimension_numbers = #tpu.dot_dimension_numbers<[1], [0], [0], [1], [0, 0, 1, 1], [], []>} : vector<16x32xf32>, vector<32x32xf32>, vector<16x32xf32> -> vector<16x32xf32>
    %72 = vector.broadcast %69 : vector<16x1xf32> to vector<16x32xf32>
    %73 = arith.addf %72, %71 : vector<16x32xf32>
    %c808 = arith.constant 808 : index
    %c0_40 = arith.constant 0 : index
    %74 = vector.load %arg5[%c808, %c0_40] : memref<880x32xf32, #tpu.memory_space<vmem>>, vector<16x32xf32>
    %cst_41 = arith.constant dense<0.000000e+00> : vector<16x32xf32>
    %75 = tpu.matmul %74, %47, %cst_41 {dimension_numbers = #tpu.dot_dimension_numbers<[1], [0], [0], [1], [0, 0, 1, 1], [], []>} : vector<16x32xf32>, vector<32x32xf32>, vector<16x32xf32> -> vector<16x32xf32>
    %76 = arith.addf %73, %75 : vector<16x32xf32>
    %c824 = arith.constant 824 : index
    %c0_42 = arith.constant 0 : index
    %77 = vector.load %arg5[%c824, %c0_42] : memref<880x32xf32, #tpu.memory_space<vmem>>, vector<16x32xf32>
    %cst_43 = arith.constant dense<0.000000e+00> : vector<16x32xf32>
    %78 = tpu.matmul %77, %49, %cst_43 {dimension_numbers = #tpu.dot_dimension_numbers<[1], [0], [0], [1], [0, 0, 1, 1], [], []>} : vector<16x32xf32>, vector<32x32xf32>, vector<16x32xf32> -> vector<16x32xf32>
    %79 = arith.addf %76, %78 : vector<16x32xf32>
    %cst_44 = arith.constant 0.000000e+00 : f32
    %80 = vector.broadcast %cst_44 : f32 to vector<16x32xf32>
    %81 = arith.maximumf %79, %80 : vector<16x32xf32>
    %c856 = arith.constant 856 : index
    %c0_45 = arith.constant 0 : index
    %82 = vector.load %arg5[%c856, %c0_45] : memref<880x32xf32, #tpu.memory_space<vmem>>, vector<1x32xf32>
    %83 = vector.broadcast %82 : vector<1x32xf32> to vector<16x32xf32>
    %84 = arith.mulf %81, %83 : vector<16x32xf32>
    %cst_46 = arith.constant dense<0xFF800000> : vector<16xf32>
    %85 = vector.multi_reduction <maximumf>, %84, %cst_46 [1] : vector<16x32xf32> to vector<16xf32>
    %86 = vector.shape_cast %85 : vector<16xf32> to vector<16x1xf32>
    %c864 = arith.constant 864 : index
    %c0_47 = arith.constant 0 : index
    %87 = vector.load %arg5[%c864, %c0_47] : memref<880x32xf32, #tpu.memory_space<vmem>>, vector<2x16xf32>
    %cst_48 = arith.constant dense<0.000000e+00> : vector<2x1xf32>
    %88 = tpu.matmul %87, %86, %cst_48 {dimension_numbers = #tpu.dot_dimension_numbers<[1], [0], [0], [1], [0, 0, 1, 1], [], []>} : vector<2x16xf32>, vector<16x1xf32>, vector<2x1xf32> -> vector<2x1xf32>
    %89 = arith.addf %68, %88 : vector<2x1xf32>
    %c0_49 = arith.constant 0 : index
    %c0_50 = arith.constant 0 : index
    %c0_51 = arith.constant 0 : index
    %90 = vector.load %arg6[%c0_49, %c0_50, %c0_51] : memref<1x2x1xf32, #tpu.memory_space<vmem>>, vector<1x2x1xf32>
    %91 = vector.shape_cast %90 : vector<1x2x1xf32> to vector<2x1xf32>
    %92 = vector.shape_cast %89 : vector<2x1xf32> to vector<1x2x1xf32>
    tpu.vector_store %arg6[%c0_49, %c0_50, %c0_51], %92 {strides = array<i32>} : memref<1x2x1xf32, #tpu.memory_space<vmem>>, vector<1x2x1xf32>,
    return
  }
  func.func @transform_0(%arg0: i32) -> (i32, i32) {
    %c0_i32 = arith.constant 0 : i32
    %c0_i32_0 = arith.constant 0 : i32
    return %arg0, %c0_i32 : i32, i32
  }
  func.func @transform_1(%arg0: i32) -> (i32, i32) {
    %c0_i32 = arith.constant 0 : i32
    %c0_i32_0 = arith.constant 0 : i32
    return %arg0, %c0_i32 : i32, i32
  }
  func.func @transform_2(%arg0: i32) -> (i32, i32) {
    %c0_i32 = arith.constant 0 : i32
    %c0_i32_0 = arith.constant 0 : i32
    return %arg0, %c0_i32 : i32, i32
  }
  func.func @transform_3(%arg0: i32) -> (i32, i32) {
    %c0_i32 = arith.constant 0 : i32
    %c0_i32_0 = arith.constant 0 : i32
    %c0_i32_1 = arith.constant 0 : i32
    return %c0_i32, %c0_i32_0 : i32, i32
  }
  func.func @transform_4(%arg0: i32) -> (i32, i32) {
    %c0_i32 = arith.constant 0 : i32
    %c0_i32_0 = arith.constant 0 : i32
    %c0_i32_1 = arith.constant 0 : i32
    return %c0_i32, %c0_i32_0 : i32, i32
  }
  func.func @transform_5(%arg0: i32) -> (i32, i32, i32) {
    %c0_i32 = arith.constant 0 : i32
    %c0_i32_0 = arith.constant 0 : i32
    %c0_i32_1 = arith.constant 0 : i32
    return %arg0, %c0_i32, %c0_i32_0 : i32, i32, i32
  }
}

</mosaic_0001>

<bundles_post_ra>
// kernel: forward.1
= control target key start
LH: loop header
LB: loop body
LE: loop exit
PB: predicated region body
PF: predicated region fallthrough
CT: control target
= control target key end

     0   :  { %10 = vsyncpa [#allocation3], 0  ;;  %s3332_s18 = smov [#allocation2]   ;;  %s3907_s0 = inlined_call_operand.vmem [shape: s32[128,1], index: 0, kind: input, shape index: {}]   ;;  %s3908_s1 = inlined_call_operand.vmem [shape: s32[32,1], index: 1, kind: input, shape index: {}]   ;;  %s3909_s2 = inlined_call_operand.vmem [shape: f32[128,1], index: 2, kind: input, shape index: {}]   ;;  %s3910_s3 = inlined_call_operand.vmem [shape: f32[32,128], index: 3, kind: input, shape index: {}]   ;;  %s3911_s4 = inlined_call_operand.hbm [shape: f32[880,32], index: 4, kind: input, shape index: {}]   ;;  %s3912_s5 = inlined_call_operand.vmem [shape: f32[1,2,1], index: 5, kind: output, shape index: {}]  }
   0x1   :  { %s24_s19 = sshll.u32 %s3332_s18, 4  ;;  %s3308_s22 = scalar_lea.hbm %s3911_s4, 14080  ;;  %s25_s19 = int_to_ptr.vmem [resolvable:$true] %s24_s19 }
   0x2   :  { %p3309_p0 = scmp.ne.s32.totalorder %s3911_s4, %s3308_s22  ;;  %p3312_p1 = scmp.lt.u32.totalorder %s3308_s22, %s3911_s4 }
   0x4   :  { %p3314_p2 = pnand %p3312_p1, %p3309_p0 }
   0x6   :  { %3317 = shalt.err (!%p3314_p2)
}
   0x7   :  { %s3318_s27 = scalar_lea.vmem %s25_s19, 14080  ;;  %p3323_p4 = scmp.lt.s32.totalorder %s25_s19, %s25_s19 }
   0x8   :  { %p3319_p3 = scmp.ne.s32.totalorder %s25_s19, %s3318_s27  ;;  %p3324_p5 = scmp.lt.s32.totalorder %s3318_s27, %s3318_s27 }
   0xa   :  { %p3325_p6 = por %p3324_p5, %p3323_p4 }
   0xc   :  { %p3326_p7 = pnand %p3325_p6, %p3319_p3 }
   0xe   :  { %3329 = shalt.err (!%p3326_p7)
}
   0xf   :  { %s3333_s28 = smov 128   ;;  %s3334_s29 = smov 8  }
  0x10   :  { %30 = dma.hbm_to_vmem [thread:$0]  %s3911_s4, 14080, %s25_s19, [#allocation3], %s3333_s28, %s3333_s28, %s3334_s29  }
  0x11   :  { %3330 = dma.done.wait [#allocation3], 14080  }
  0x12   :  { %3331 = vsyncadd [#allocation3], 4294953216  ;;  %v3335_v0 = vmov 0   ;;  %v3336_v1 = vmov 0.0|0.0   ;;  %v39_v2 = vld [vmem:[%s3907_s0 + $0x10] sm:$0xff]  ;;  %v37_v3 = vld [vmem:[%s3907_s0] sm:$0xff] }
  0x13   :  { %3233 = vset.pattern.permute.xlu1 %v3335_v0  ;;  %3232 = vset.pattern.permute.xlu0 %v3335_v0  ;;  %v416_v4 = vld [vmem:[%s3908_s1] sm:$0xff]  ;;  %v38_v5 = vld [vmem:[%s3907_s0 + $0x8] sm:$0xff]  ;;  %v40_v7 = vld [vmem:[%s3907_s0 + $0x18] sm:$0xff]  ;;  %vm222_vm0 = vcmask 588800  }
  0x14   :  { %3025 = vmatprep.subr.bf16.mxu0 %v3336_v1  ;;  %3061 = vmatprep.subr.bf16.mxu1 %v3336_v1  ;;  %v417_v6 = vld [vmem:[%s3908_s1 + $0x8] sm:$0xff]  ;;  %v418_v8 = vld [vmem:[%s3908_s1 + $0x10] sm:$0xff]  ;;  %v41_v9 = vld [vmem:[%s3907_s0 + $0x20] sm:$0xff] }
  0x15   :  { %60 = vperm.xlu1 %3233, %v39_v2   ;;  %54 = vperm.xlu0 %3232, %v37_v3   ;;  %v197_v10 = vld [vmem:[#allocation2] sm:$0xff]  ;;  %v198_v11 = vld [vmem:[#allocation2 + $0x8] sm:$0xff]  ;;  %v199_v12 = vld [vmem:[#allocation2 + $0x10] sm:$0xff] }
  0x16   :  { %v3026_v13 = vpack.c.bf16 %v198_v11, %v197_v10  ;;  %v200_v14 = vld [vmem:[#allocation2 + $0x18] sm:$0xff]  ;;  %v456_v15 = vld [vmem:[#allocation2 + $0xc8] sm:$0xff]  ;;  %v457_v16 = vld [vmem:[#allocation2 + $0xd0] sm:$0xff] }
  0x17   :  { %v419_v17 = vld [vmem:[%s3908_s1 + $0x18] sm:$0xff]  ;;  %v42_v18 = vld [vmem:[%s3907_s0 + $0x28] sm:$0xff]  ;;  %v3062_v19 = vpack.c.bf16 %v457_v16, %v456_v15  ;;  %v3029_v21 = vpack.c.bf16 %v200_v14, %v199_v12  ;;  %v459_v22 = vld [vmem:[#allocation2 + $0xe0] sm:$0xff] }
  0x18   :  { %v458_v20 = vld [vmem:[#allocation2 + $0xd8] sm:$0xff]  ;;  %3027 = vmatpush1.bf16.msra.mxu0 %v3026_v13  ;;  %v201_v23 = vld [vmem:[#allocation2 + $0x20] sm:$0xff]  ;;  %v202_v24 = vld [vmem:[#allocation2 + $0x28] sm:$0xff] }
  0x19   :  { %421 = vperm.xlu1 %3233, %v416_v4   ;;  %57 = vperm.xlu0 %3232, %v38_v5   ;;  %v3065_v25 = vpack.c.bf16 %v459_v22, %v458_v20  ;;  %v460_v26 = vld [vmem:[#allocation2 + $0xe8] sm:$0xff]  ;;  %v461_v27 = vld [vmem:[#allocation2 + $0xf0] sm:$0xff]  ;;  %v44_v28 = vld [vmem:[%s3907_s0 + $0x38] sm:$0xff]  ;;  %v3032_v30 = vpack.c.bf16 %v202_v24, %v201_v23 }
  0x1a   :  { %3028 = vmatprep.subr.bf16.mxu0 %v3336_v1  ;;  %3063 = vmatpush1.bf16.msra.mxu1 %v3062_v19  ;;  %v43_v29 = vld [vmem:[%s3907_s0 + $0x30] sm:$0xff]  ;;  %v204_v32 = vld [vmem:[#allocation2 + $0x38] sm:$0xff]  ;;  %v3068_v33 = vpack.c.bf16 %v461_v27, %v460_v26  ;;  %v463_v35 = vld [vmem:[#allocation2 + $0x100] sm:$0xff] }
  0x1b   :  { %3064 = vmatprep.subr.bf16.mxu1 %v3336_v1  ;;  %v203_v31 = vld [vmem:[#allocation2 + $0x30] sm:$0xff]  ;;  %v462_v34 = vld [vmem:[#allocation2 + $0xf8] sm:$0xff]  ;;  %v46_v36 = vld [vmem:[%s3907_s0 + $0x48] sm:$0xff] }
  0x1c   :  { %3030 = vmatpush1.bf16.msra.mxu0 %v3029_v21  ;;  %v45_v37 = vld [vmem:[%s3907_s0 + $0x40] sm:$0xff]  ;;  %v3035_v38 = vpack.c.bf16 %v204_v32, %v203_v31  ;;  %v206_v40 = vld [vmem:[#allocation2 + $0x48] sm:$0xff]  ;;  %v3071_v41 = vpack.c.bf16 %v463_v35, %v462_v34  ;;  %v465_v43 = vld [vmem:[#allocation2 + $0x110] sm:$0xff] }
  0x1d   :  { %424 = vperm.xlu1 %3233, %v417_v6   ;;  %63 = vperm.xlu0 %3232, %v40_v7   ;;  %v205_v39 = vld [vmem:[#allocation2 + $0x40] sm:$0xff]  ;;  %v464_v42 = vld [vmem:[#allocation2 + $0x108] sm:$0xff]  ;;  %v48_v44 = vld [vmem:[%s3907_s0 + $0x58] sm:$0xff] }
  0x1e   :  { %3031 = vmatprep.subr.bf16.mxu0 %v3336_v1  ;;  %3066 = vmatpush1.bf16.msra.mxu1 %v3065_v25  ;;  %v47_v45 = vld [vmem:[%s3907_s0 + $0x50] sm:$0xff]  ;;  %v3038_v46 = vpack.c.bf16 %v206_v40, %v205_v39  ;;  %v208_v48 = vld [vmem:[#allocation2 + $0x58] sm:$0xff]  ;;  %v3074_v49 = vpack.c.bf16 %v465_v43, %v464_v42  ;;  %v467_v51 = vld [vmem:[#allocation2 + $0x120] sm:$0xff]  ;;  %v3337_v43 = vmov 0.0  }
  0x1f   :  { %3067 = vmatprep.subr.bf16.mxu1 %v3336_v1  ;;  %v207_v47 = vld [vmem:[#allocation2 + $0x50] sm:$0xff]  ;;  %v466_v50 = vld [vmem:[#allocation2 + $0x118] sm:$0xff]  ;;  %v50_v52 = vld [vmem:[%s3907_s0 + $0x68] sm:$0xff] }
  0x20   :  { %3033 = vmatpush1.bf16.msra.mxu0 %v3032_v30  ;;  %v49_v53 = vld [vmem:[%s3907_s0 + $0x60] sm:$0xff]  ;;  %v3041_v54 = vpack.c.bf16 %v208_v48, %v207_v47  ;;  %v210_v56 = vld [vmem:[#allocation2 + $0x68] sm:$0xff]  ;;  %v3077_v57 = vpack.c.bf16 %v467_v51, %v466_v50  ;;  %v469_v59 = vld [vmem:[#allocation2 + $0x130] sm:$0xff]  ;;  %v34_v50 = vlaneseq }
  0x21   :  { %427 = vperm.xlu1 %3233, %v418_v8   ;;  %66 = vperm.xlu0 %3232, %v41_v9   ;;  %v209_v55 = vld [vmem:[#allocation2 + $0x60] sm:$0xff]  ;;  %v468_v58 = vld [vmem:[#allocation2 + $0x128] sm:$0xff]  ;;  %v52_v60 = vld [vmem:[%s3907_s0 + $0x78] sm:$0xff] }
  0x22   :  { %3034 = vmatprep.subr.bf16.mxu0 %v3336_v1  ;;  %3069 = vmatpush1.bf16.msra.mxu1 %v3068_v33  ;;  %v51_v61 = vld [vmem:[%s3907_s0 + $0x70] sm:$0xff]  ;;  %v3044_v62 = vpack.c.bf16 %v210_v56, %v209_v55  ;;  %v212_v0 = vld [vmem:[#allocation2 + $0x78] sm:$0xff]  ;;  %v3080_v2 = vpack.c.bf16 %v469_v59, %v468_v58  ;;  %v471_v4 = vld [vmem:[#allocation2 + $0x140] sm:$0xff]  ;;  %v3517_v51 = vand.u32 127, %v34_v50 }
  0x23   :  { %3070 = vmatprep.subr.bf16.mxu1 %v3336_v1  ;;  %v211_v63 = vld [vmem:[#allocation2 + $0x70] sm:$0xff]  ;;  %v470_v3 = vld [vmem:[#allocation2 + $0x138] sm:$0xff]  ;;  %v801_v5 = vld [vmem:[%s3909_s2 + $0x8] sm:$0xff] }
  0x24   :  { %3036 = vmatpush1.bf16.msra.mxu0 %v3035_v38  ;;  %v800_v6 = vld [vmem:[%s3909_s2] sm:$0xff]  ;;  %v3047_v7 = vpack.c.bf16 %v212_v0, %v211_v63  ;;  %v214_v9 = vld [vmem:[#allocation2 + $0x88] sm:$0xff]  ;;  %v3083_v10 = vpack.c.bf16 %v471_v4, %v470_v3  ;;  %v473_v12 = vld [vmem:[#allocation2 + $0x150] sm:$0xff] }
  0x25   :  { %430 = vperm.xlu1 %3233, %v419_v17   ;;  %69 = vperm.xlu0 %3232, %v42_v18   ;;  %v213_v8 = vld [vmem:[#allocation2 + $0x80] sm:$0xff]  ;;  %v472_v11 = vld [vmem:[#allocation2 + $0x148] sm:$0xff]  ;;  %v803_v13 = vld [vmem:[%s3909_s2 + $0x18] sm:$0xff] }
  0x26   :  { %3037 = vmatprep.subr.bf16.mxu0 %v3336_v1  ;;  %3072 = vmatpush1.bf16.msra.mxu1 %v3071_v41  ;;  %v802_v14 = vld [vmem:[%s3909_s2 + $0x10] sm:$0xff]  ;;  %v3050_v15 = vpack.c.bf16 %v214_v9, %v213_v8  ;;  %v216_v17 = vld [vmem:[#allocation2 + $0x98] sm:$0xff]  ;;  %v3086_v18 = vpack.c.bf16 %v473_v12, %v472_v11  ;;  %v475_v20 = vld [vmem:[#allocation2 + $0x160] sm:$0xff] }
  0x27   :  { %3073 = vmatprep.subr.bf16.mxu1 %v3336_v1  ;;  %v215_v16 = vld [vmem:[#allocation2 + $0x90] sm:$0xff]  ;;  %v474_v19 = vld [vmem:[#allocation2 + $0x158] sm:$0xff]  ;;  %v805_v21 = vld [vmem:[%s3909_s2 + $0x28] sm:$0xff] }
  0x28   :  { %3039 = vmatpush1.bf16.msra.mxu0 %v3038_v46  ;;  %v804_v22 = vld [vmem:[%s3909_s2 + $0x20] sm:$0xff]  ;;  %v3053_v23 = vpack.c.bf16 %v216_v17, %v215_v16  ;;  %v218_v25 = vld [vmem:[#allocation2 + $0xa8] sm:$0xff]  ;;  %v3089_v26 = vpack.c.bf16 %v475_v20, %v474_v19  ;;  %v806_v30 = vld [vmem:[%s3909_s2 + $0x30] sm:$0xff] }
  0x29   :  { %75 = vperm.xlu1 %3233, %v44_v28   ;;  %72 = vperm.xlu0 %3232, %v43_v29   ;;  %v217_v24 = vld [vmem:[#allocation2 + $0xa0] sm:$0xff]  ;;  %v476_v27 = vld [vmem:[#allocation2 + $0x168] sm:$0xff]  ;;  %v477_v28 = vld [vmem:[#allocation2 + $0x170] sm:$0xff] }
  0x2a   :  { %3040 = vmatprep.subr.bf16.mxu0 %v3336_v1  ;;  %3075 = vmatpush1.bf16.msra.mxu1 %v3074_v49  ;;  %v807_v29 = vld [vmem:[%s3909_s2 + $0x38] sm:$0xff]  ;;  %v3056_v31 = vpack.c.bf16 %v218_v25, %v217_v24  ;;  %v219_v32 = vld [vmem:[#allocation2 + $0xb0] sm:$0xff]  ;;  %v3092_v34 = vpack.c.bf16 %v477_v28, %v476_v27  ;;  %v808_v38 = vld [vmem:[%s3909_s2 + $0x40] sm:$0xff] }
  0x2b   :  { %3076 = vmatprep.subr.bf16.mxu1 %v3336_v1  ;;  %v220_v33 = vld [vmem:[#allocation2 + $0xb8] sm:$0xff]  ;;  %v810_v42 = vld [vmem:[%s3909_s2 + $0x50] sm:$0xff]  ;;  %v813_v46 = vld [vmem:[%s3909_s2 + $0x68] sm:$0xff] }
  0x2c   :  { %3042 = vmatpush1.bf16.msra.mxu0 %v3041_v54  ;;  %v478_v35 = vld [vmem:[#allocation2 + $0x178] sm:$0xff]  ;;  %v3059_v39 = vpack.c.bf16 %v220_v33, %v219_v32  ;;  %v812_v47 = vld [vmem:[%s3909_s2 + $0x60] sm:$0xff]  ;;  %v814_v49 = vld [vmem:[%s3909_s2 + $0x70] sm:$0xff] }
  0x2d   :  { %81 = vperm.xlu1 %3233, %v46_v36   ;;  %78 = vperm.xlu0 %3232, %v45_v37   ;;  %v479_v36 = vld [vmem:[#allocation2 + $0x180] sm:$0xff]  ;;  %v809_v37 = vld [vmem:[%s3909_s2 + $0x48] sm:$0xff]  ;;  %v811_v41 = vld [vmem:[%s3909_s2 + $0x58] sm:$0xff] }
  0x2e   :  { %3043 = vmatprep.subr.bf16.mxu0 %v3336_v1  ;;  %3078 = vmatpush1.bf16.msra.mxu1 %v3077_v57  ;;  %v3095_v40 = vpack.c.bf16 %v479_v36, %v478_v35  ;;  %v815_v48 = vld [vmem:[%s3909_s2 + $0x78] sm:$0xff]  ;;  %v3338_v57 = vmov 1.0   ;;  %s3339_s2 = smov 120  }
  0x2f   :  { %3079 = vmatprep.subr.bf16.mxu1 %v3336_v1 }
  0x30   :  { %3045 = vmatpush1.bf16.msra.mxu0 %v3044_v62 }
  0x31   :  { %87 = vperm.xlu1 %3233, %v48_v44   ;;  %84 = vperm.xlu0 %3232, %v47_v45   ;;  %v221_v44 = vld [vmem:[#allocation2 + $0xc0] sm:$0xff]  ;;  %v480_v45 = vld [vmem:[#allocation2 + $0x188] sm:$0xff] }
  0x32   :  { %3046 = vmatprep.subr.bf16.mxu0 %v3336_v1  ;;  %3081 = vmatpush1.bf16.msra.mxu1 %v3080_v2 }
  0x33   :  { %3082 = vmatprep.subr.bf16.mxu1 %v3336_v1 }
  0x34   :  { %3048 = vmatpush1.bf16.msra.mxu0 %v3047_v7 }
  0x35   :  { %93 = vperm.xlu1 %3233, %v50_v52   ;;  %90 = vperm.xlu0 %3232, %v49_v53   ;;  %v3520_v52 = vadd.s32 128, %v3517_v51 }
  0x36   :  { %3049 = vmatprep.subr.bf16.mxu0 %v3336_v1  ;;  %3084 = vmatpush1.bf16.msra.mxu1 %v3083_v10 }
  0x37   :  { %3085 = vmatprep.subr.bf16.mxu1 %v3336_v1 }
  0x38   :  { %3051 = vmatpush1.bf16.msra.mxu0 %v3050_v15 }
  0x39   :  { %99 = vperm.xlu1 %3233, %v52_v60   ;;  %96 = vperm.xlu0 %3232, %v51_v61  }
  0x3a   :  { %3052 = vmatprep.subr.bf16.mxu0 %v3336_v1  ;;  %3087 = vmatpush1.bf16.msra.mxu1 %v3086_v18 }
  0x3b   :  { %3088 = vmatprep.subr.bf16.mxu1 %v3336_v1 }
  0x3c   :  { %3054 = vmatpush1.bf16.msra.mxu0 %v3053_v23 }
  0x3d   :  { %823 = vperm.xlu1 %3233, %v801_v5   ;;  %818 = vperm.xlu0 %3232, %v800_v6  }
  0x3e   :  { %3055 = vmatprep.subr.bf16.mxu0 %v3336_v1  ;;  %3090 = vmatpush1.bf16.msra.mxu1 %v3089_v26 }
  0x3f   :  { %3091 = vmatprep.subr.bf16.mxu1 %v3336_v1 }
  0x40   :  { %3057 = vmatpush1.bf16.msra.mxu0 %v3056_v31 }
  0x41   :  { %833 = vperm.xlu1 %3233, %v803_v13   ;;  %828 = vperm.xlu0 %3232, %v802_v14  }
  0x42   :  { %3058 = vmatprep.subr.bf16.mxu0 %v3336_v1  ;;  %3093 = vmatpush1.bf16.msra.mxu1 %v3092_v34 }
  0x43   :  { %3094 = vmatprep.subr.bf16.mxu1 %v3336_v1 }
  0x44   :  { %3060 = vmatpush1.bf16.msra.mxu0 %v3059_v39 }
  0x45   :  { %843 = vperm.xlu1 %3233, %v805_v21   ;;  %838 = vperm.xlu0 %3232, %v804_v22  }
  0x46   :  { %319 = vmatprep.subr.mxu0 %v3337_v43  ;;  %3096 = vmatpush1.bf16.msra.mxu1 %v3095_v40 }
  0x47   :  { %541 = vmatprep.subr.mxu1 %v3337_v43 }
  0x48   :  { %320 = vmatpush1.msra.mxu0 %v221_v44 }
  0x49   :  { %853 = vperm.xlu1 %3233, %v807_v29   ;;  %848 = vperm.xlu0 %3232, %v806_v30  }
  0x4a   :  { %542 = vmatpush1.msra.mxu1 %v480_v45 }
  0x4d   :  { %863 = vperm.xlu1 %3233, %v809_v37   ;;  %858 = vperm.xlu0 %3232, %v808_v38  }
  0x51   :  { %873 = vperm.xlu1 %3233, %v811_v41   ;;  %868 = vperm.xlu0 %3232, %v810_v42  }
  0x55   :  { %883 = vperm.xlu1 %3233, %v813_v46   ;;  %878 = vperm.xlu0 %3232, %v812_v47  }
  0x59   :  { %893 = vperm.xlu1 %3233, %v815_v48   ;;  %888 = vperm.xlu0 %3232, %v814_v49  }
  0x94   :  { %v61_v53 = vpop.permute.xlu1 %60  ;;  %v55_v54 = vpop.permute.xlu0 %54 }
  0x95   :  { %vm101_vm1 = vcmp.eq.s32.totalorder %v55_v54, %v3517_v51  ;;  %vm102_vm2 = vcmp.eq.s32.totalorder %v55_v54, %v3520_v52  ;;  %vm106_vm3 = vcmp.eq.s32.totalorder %v61_v53, %v3520_v52  ;;  %vm105_vm10 = vcmp.eq.s32.totalorder %v61_v53, %v3517_v51 }
  0x96   :  { %v2502_v55 = vsel %vm102_vm2, 1.0, %v3337_v43  ;;  %v2506_v61 = vsel %vm106_vm3, 1.0, %v3337_v43 }
  0x97   :  { %2533 = vmatprep.mubr.msk.f32.mxu0 %vm222_vm0, %v2502_v55 }
  0x98   :  { %v422_v56 = vpop.permute.xlu1 %421  ;;  %2534 = vmatmul.mubr.msk.f32.vlgmr.msra.gmra.mrb[0].mxu0 %vm101_vm1, %v3338_v57  ;;  %v58_v58 = vpop.permute.xlu0 %57 }
  0x99   :  { %vm103_vm4 = vcmp.eq.s32.totalorder %v58_v58, %v3517_v51  ;;  %vm104_vm5 = vcmp.eq.s32.totalorder %v58_v58, %v3520_v52  ;;  %vm433_vm6 = vcmp.eq.s32.totalorder %v422_v56, %v3520_v52  ;;  %vm432_vm7 = vcmp.eq.s32.totalorder %v422_v56, %v3517_v51 }
  0x9a   :  { %v2504_v59 = vsel %vm104_vm5, 1.0, %v3337_v43  ;;  %v2566_v60 = vsel %vm433_vm6, 1.0, %v3337_v43 }
  0x9b   :  { %2535 = vmatprep.mubr.msk.f32.mxu0 %vm222_vm0, %v2504_v59  ;;  %2573 = vmatprep.mubr.msk.f32.mxu1 %vm222_vm0, %v2566_v60 }
  0x9c   :  { %2574 = vmatmul.mubr.msk.f32.vlgmr.msra.gmra.mrb[0].mxu1 %vm432_vm7, %v3338_v57  ;;  %v425_v62 = vpop.permute.xlu1 %424  ;;  %2536 = vmatmul.mubr.msk.f32.gmra.mrb[2].mxu0 %vm103_vm4, %v3338_v57  ;;  %v64_v63 = vpop.permute.xlu0 %63 }
  0x9d   :  { %vm435_vm8 = vcmp.eq.s32.totalorder %v425_v62, %v3520_v52  ;;  %vm108_vm9 = vcmp.eq.s32.totalorder %v64_v63, %v3520_v52  ;;  %2537 = vmatprep.mubr.msk.f32.mxu0 %vm222_vm0, %v2506_v61  ;;  %vm434_vm11 = vcmp.eq.s32.totalorder %v425_v62, %v3517_v51  ;;  %vm107_vm14 = vcmp.eq.s32.totalorder %v64_v63, %v3517_v51 }
  0x9e   :  { %v2568_v0 = vsel %vm435_vm8, 1.0, %v3337_v43  ;;  %v2508_v2 = vsel %vm108_vm9, 1.0, %v3337_v43 }
  0x9f   :  { %2575 = vmatprep.mubr.msk.f32.mxu1 %vm222_vm0, %v2568_v0 }
  0xa0   :  { %2576 = vmatmul.mubr.msk.f32.gmra.mrb[2].mxu1 %vm434_vm11, %v3338_v57  ;;  %v428_v3 = vpop.permute.xlu1 %427  ;;  %2538 = vmatmul.mubr.msk.f32.gmra.mrb[4].mxu0 %vm105_vm10, %v3338_v57  ;;  %v67_v4 = vpop.permute.xlu0 %66 }
  0xa1   :  { %vm437_vm12 = vcmp.eq.s32.totalorder %v428_v3, %v3520_v52  ;;  %vm110_vm13 = vcmp.eq.s32.totalorder %v67_v4, %v3520_v52  ;;  %2539 = vmatprep.mubr.msk.f32.mxu0 %vm222_vm0, %v2508_v2  ;;  %vm436_vm15 = vcmp.eq.s32.totalorder %v428_v3, %v3517_v51  ;;  %vm109_vm3 = vcmp.eq.s32.totalorder %v67_v4, %v3517_v51 }
  0xa2   :  { %v2570_v5 = vsel %vm437_vm12, 1.0, %v3337_v43  ;;  %v2510_v6 = vsel %vm110_vm13, 1.0, %v3337_v43 }
  0xa3   :  { %2577 = vmatprep.mubr.msk.f32.mxu1 %vm222_vm0, %v2570_v5 }
  0xa4   :  { %2578 = vmatmul.mubr.msk.f32.gmra.mrb[4].mxu1 %vm436_vm15, %v3338_v57  ;;  %v431_v7 = vpop.permute.xlu1 %430  ;;  %2540 = vmatmul.mubr.msk.f32.gmra.mrb[6].mxu0 %vm107_vm14, %v3338_v57  ;;  %v70_v8 = vpop.permute.xlu0 %69 }
  0xa5   :  { %vm439_vm1 = vcmp.eq.s32.totalorder %v431_v7, %v3520_v52  ;;  %vm112_vm2 = vcmp.eq.s32.totalorder %v70_v8, %v3520_v52  ;;  %2541 = vmatprep.mubr.msk.f32.mxu0 %vm222_vm0, %v2510_v6  ;;  %vm438_vm4 = vcmp.eq.s32.totalorder %v431_v7, %v3517_v51  ;;  %vm111_vm6 = vcmp.eq.s32.totalorder %v70_v8, %v3517_v51 }
  0xa6   :  { %v2572_v9 = vsel %vm439_vm1, 1.0, %v3337_v43  ;;  %v2512_v10 = vsel %vm112_vm2, 1.0, %v3337_v43 }
  0xa7   :  { %2579 = vmatprep.mubr.msk.f32.mxu1 %vm222_vm0, %v2572_v9 }
  0xa8   :  { %2580 = vmatmul.mubr.msk.f32.gmra.mrb[6].mxu1 %vm438_vm4, %v3338_v57  ;;  %2542 = vmatmul.mubr.msk.f32.gmra.mrb[8].mxu0 %vm109_vm3, %v3338_v57  ;;  %v73_v11 = vpop.permute.xlu0 %72  ;;  %v76_v12 = vpop.permute.xlu1 %75 }
  0xa9   :  { %vm114_vm5 = vcmp.eq.s32.totalorder %v73_v11, %v3520_v52  ;;  %2543 = vmatprep.mubr.msk.f32.mxu0 %vm222_vm0, %v2512_v10  ;;  %vm116_vm7 = vcmp.eq.s32.totalorder %v76_v12, %v3520_v52  ;;  %vm113_vm8 = vcmp.eq.s32.totalorder %v73_v11, %v3517_v51  ;;  %vm115_vm10 = vcmp.eq.s32.totalorder %v76_v12, %v3517_v51 }
  0xaa   :  { %v2514_v13 = vsel %vm114_vm5, 1.0, %v3337_v43  ;;  %v2516_v15 = vsel %vm116_vm7, 1.0, %v3337_v43 }
  0xac   :  { %2544 = vmatmul.mubr.msk.f32.gmra.mrb[10].mxu0 %vm111_vm6, %v3338_v57  ;;  %v79_v14 = vpop.permute.xlu0 %78  ;;  %v82_v16 = vpop.permute.xlu1 %81 }
  0xad   :  { %2545 = vmatprep.mubr.msk.f32.mxu0 %vm222_vm0, %v2514_v13  ;;  %vm118_vm9 = vcmp.eq.s32.totalorder %v79_v14, %v3520_v52  ;;  %vm120_vm11 = vcmp.eq.s32.totalorder %v82_v16, %v3520_v52  ;;  %vm117_vm12 = vcmp.eq.s32.totalorder %v79_v14, %v3517_v51  ;;  %vm119_vm14 = vcmp.eq.s32.totalorder %v82_v16, %v3517_v51 }
  0xae   :  { %v2518_v17 = vsel %vm118_vm9, 1.0, %v3337_v43  ;;  %v2520_v19 = vsel %vm120_vm11, 1.0, %v3337_v43  ;;  %vm578_vm11 = vcmask 64512  }
  0xb0   :  { %2546 = vmatmul.mubr.msk.f32.gmra.mrb[12].mxu0 %vm113_vm8, %v3338_v57  ;;  %v85_v18 = vpop.permute.xlu0 %84  ;;  %v88_v20 = vpop.permute.xlu1 %87 }
  0xb1   :  { %2547 = vmatprep.mubr.msk.f32.mxu0 %vm222_vm0, %v2516_v15  ;;  %vm122_vm13 = vcmp.eq.s32.totalorder %v85_v18, %v3520_v52  ;;  %vm124_vm15 = vcmp.eq.s32.totalorder %v88_v20, %v3520_v52  ;;  %vm121_vm1 = vcmp.eq.s32.totalorder %v85_v18, %v3517_v51  ;;  %vm123_vm3 = vcmp.eq.s32.totalorder %v88_v20, %v3517_v51  ;;  %v785_v18 = vld [vmem:[#allocation2 + $0x198] sm:$0xff]  ;;  %v784_v20 = vld [vmem:[#allocation2 + $0x190] sm:$0xff] }
  0xb2   :  { %v2522_v21 = vsel %vm122_vm13, 1.0, %v3337_v43  ;;  %v2524_v23 = vsel %vm124_vm15, 1.0, %v3337_v43  ;;  %vm3340_vm13 = vmmov 0   ;;  %vm2494_vm15 = vcmask 1024  }
  0xb4   :  { %2548 = vmatmul.mubr.msk.f32.gmra.mrb[14].mxu0 %vm115_vm10, %v3338_v57  ;;  %v91_v22 = vpop.permute.xlu0 %90  ;;  %v94_v24 = vpop.permute.xlu1 %93 }
  0xb5   :  { %2549 = vmatprep.mubr.msk.f32.mxu0 %vm222_vm0, %v2518_v17  ;;  %vm126_vm2 = vcmp.eq.s32.totalorder %v91_v22, %v3520_v52  ;;  %vm128_vm4 = vcmp.eq.s32.totalorder %v94_v24, %v3520_v52  ;;  %vm125_vm5 = vcmp.eq.s32.totalorder %v91_v22, %v3517_v51  ;;  %vm127_vm7 = vcmp.eq.s32.totalorder %v94_v24, %v3517_v51 }
  0xb6   :  { %v2526_v25 = vsel %vm126_vm2, 1.0, %v3337_v43  ;;  %v2528_v27 = vsel %vm128_vm4, 1.0, %v3337_v43 }
  0xb8   :  { %2550 = vmatmul.mubr.msk.f32.gmra.mrb[16].mxu0 %vm117_vm12, %v3338_v57  ;;  %v97_v26 = vpop.permute.xlu0 %96  ;;  %v100_v28 = vpop.permute.xlu1 %99  ;;  %vm976_vm12 = vcmask 261120  }
  0xb9   :  { %2551 = vmatprep.mubr.msk.f32.mxu0 %vm222_vm0, %v2520_v19  ;;  %vm130_vm6 = vcmp.eq.s32.totalorder %v97_v26, %v3520_v52  ;;  %vm132_vm8 = vcmp.eq.s32.totalorder %v100_v28, %v3520_v52  ;;  %vm129_vm9 = vcmp.eq.s32.totalorder %v97_v26, %v3517_v51  ;;  %vm131_vm10 = vcmp.eq.s32.totalorder %v100_v28, %v3517_v51 }
  0xba   :  { %v2530_v29 = vsel %vm130_vm6, 1.0, %v3337_v43  ;;  %v2532_v30 = vsel %vm132_vm8, 1.0, %v3337_v43  ;;  %v2602_v19 = vadd.f32 -1.0, %v785_v18 }
  0xbc   :  { %2552 = vmatmul.mubr.msk.f32.gmra.mrb[18].mxu0 %vm119_vm14, %v3338_v57  ;;  %v824_v14 = vpop.permute.xlu1 %823  ;;  %v819_v15 = vpop.permute.xlu0 %818  ;;  %vm2062_vm14 = vcmask 130048  }
  0xbd   :  { %2553 = vmatprep.mubr.msk.f32.mxu0 %vm222_vm0, %v2522_v21  ;;  %v2601_v21 = vadd.f32 -1.0, %v784_v20  ;;  %v897_v24 = vmul.f32 %v824_v14, %v785_v18  ;;  %v896_v28 = vmul.f32 %v819_v15, %v784_v20  ;;  %v793_v20 = vld [vmem:[#allocation2 + $0x1d8] sm:$0xff] }
  0xc0   :  { %2554 = vmatmul.mubr.msk.f32.gmra.mrb[20].mxu0 %vm121_vm1, %v3338_v57  ;;  %v834_v16 = vpop.permute.xlu1 %833  ;;  %v829_v17 = vpop.permute.xlu0 %828 }
  0xc1   :  { %2555 = vmatprep.mubr.msk.f32.mxu0 %vm222_vm0, %v2524_v23  ;;  %v945_v23 = vmul.f32 1e+30, %v2602_v19 }
  0xc4   :  { %2556 = vmatmul.mubr.msk.f32.gmra.mrb[22].mxu0 %vm123_vm3, %v3338_v57  ;;  %v844_v22 = vpop.permute.xlu1 %843  ;;  %v839_v26 = vpop.permute.xlu0 %838 }
  0xc5   :  { %2557 = vmatprep.mubr.msk.f32.mxu0 %vm222_vm0, %v2526_v25  ;;  %v786_v25 = vld [vmem:[#allocation2 + $0x1a0] sm:$0xff] }
  0xc8   :  { %2558 = vmatmul.mubr.msk.f32.gmra.mrb[24].mxu0 %vm125_vm5, %v3338_v57 }
  0xc9   :  { %2559 = vmatprep.mubr.msk.f32.mxu0 %vm222_vm0, %v2528_v27  ;;  %v944_v27 = vmul.f32 1e+30, %v2601_v21 }
  0xcc   :  { %2560 = vmatmul.mubr.msk.f32.gmra.mrb[26].mxu0 %vm127_vm7, %v3338_v57 }
  0xcd   :  { %2561 = vmatprep.mubr.msk.f32.mxu0 %vm222_vm0, %v2530_v29  ;;  %v2603_v29 = vadd.f32 -1.0, %v786_v25 }
  0xd0   :  { %2562 = vmatmul.mubr.msk.f32.gmra.mrb[28].mxu0 %vm129_vm9, %v3338_v57 }
  0xd1   :  { %2563 = vmatprep.mubr.msk.f32.mxu0 %vm222_vm0, %v2532_v30  ;;  %vm3629_vm0 = vmpackc.low %vm578_vm11, %vm578_vm11 }
  0xd4   :  { %2564 = vmatmul.mubr.msk.f32.gmra.mrb[30].mxu0 %vm131_vm10, %v3338_v57 }
 0x16b   :  { %v337_v31 = vpop.f32.mrb[0].mxu0 }
 0x16c   :  { %v339_v32 = vpop.f32.mrb[1].mxu0  ;;  %2808 = vmatprep.mubr.msk.f32.mxu1 %vm578_vm11, %v337_v31  ;;  %v787_v31 = vld [vmem:[#allocation2 + $0x1a8] sm:$0xff] }
 0x16f   :  { %v342_v33 = vpop.f32.mrb[2].mxu0  ;;  %v3623_v34 = vpop.f32.mrb[0].mxu1 }
 0x170   :  { %v344_v35 = vpop.f32.mrb[3].mxu0  ;;  %v561_v36 = vpop.f32.mrb[1].mxu1 }
 0x171   :  { %v2604_v35 = vadd.f32 -1.0, %v787_v31  ;;  %v788_v36 = vld [vmem:[#allocation2 + $0x1b0] sm:$0xff] }
 0x172   :  { %v2605_v39 = vadd.f32 -1.0, %v788_v36 }
 0x173   :  { %v347_v37 = vpop.f32.mrb[4].mxu0  ;;  %v3625_v38 = vpop.f32.mrb[2].mxu1 }
 0x174   :  { %v3234_v40 = vpack.i.bf16 %v3625_v38, %v3623_v34  ;;  %v3097_v41 = vpack.c.bf16 %v3625_v38, %v3623_v34  ;;  %v349_v42 = vpop.f32.mrb[5].mxu0  ;;  %v566_v44 = vpop.f32.mrb[3].mxu1 }
 0x175   :  { %v899_v42 = vmul.f32 %v834_v16, %v787_v31  ;;  %v946_v44 = vmul.f32 1e+30, %v2603_v29 }
 0x176   :  { %3099 = vmatprep.subr.msk.bf16.mxu1 %vm3629_vm0, %v3097_v41 }
 0x177   :  { %v352_v45 = vpop.f32.mrb[6].mxu0  ;;  %v3639_v46 = vpop.f32.mrb[4].mxu1  ;;  %3102 = vmatpush3.bf16.xpose.msk.msra.mxu1 %vm3629_vm0, %v3097_v41 }
 0x178   :  { %v354_v47 = vpop.f32.mrb[7].mxu0  ;;  %v571_v48 = vpop.f32.mrb[5].mxu1 }
 0x179   :  { %v789_v47 = vld [vmem:[#allocation2 + $0x1b8] sm:$0xff]  ;;  %v854_v48 = vpop.permute.xlu1 %853 }
 0x17b   :  { %v357_v49 = vpop.f32.mrb[8].mxu0  ;;  %v3643_v50 = vpop.f32.mrb[6].mxu1 }
 0x17c   :  { %v3239_v51 = vpack.i.bf16 %v3643_v50, %v3639_v46  ;;  %v3103_v52 = vpack.c.bf16 %v3643_v50, %v3639_v46  ;;  %v359_v53 = vpop.f32.mrb[9].mxu0  ;;  %v576_v54 = vpop.f32.mrb[7].mxu1 }
 0x17d   :  { %v2606_v53 = vadd.f32 -1.0, %v789_v47  ;;  %v849_v54 = vpop.permute.xlu0 %848 }
 0x17e   :  { %3105 = vmatprep.subr.msk.bf16.mxu1 %vm3629_vm0, %v3103_v52 }
 0x17f   :  { %v362_v55 = vpop.f32.mrb[10].mxu0  ;;  %3108 = vmatpush3.bf16.xpose.msk.msra.mxu1 %vm3629_vm0, %v3103_v52 }
 0x180   :  { %v364_v56 = vpop.f32.mrb[11].mxu0 }
 0x183   :  { %v367_v57 = vpop.f32.mrb[12].mxu0 }
 0x184   :  { %v369_v58 = vpop.f32.mrb[13].mxu0 }
 0x186   :  { %2809 = vmatmul.mubr.msk.f32.vlgmr.msra.gmra.mrb[8].mxu1 %vm578_vm11, %v342_v33 }
 0x187   :  { %v372_v59 = vpop.f32.mrb[14].mxu0  ;;  %2811 = vmatprep.mubr.msk.f32.mxu1 %vm578_vm11, %v347_v37 }
 0x188   :  { %v374_v60 = vpop.f32.mrb[15].mxu0 }
 0x18a   :  { %2812 = vmatmul.mubr.msk.f32.gmra.mrb[10].mxu1 %vm578_vm11, %v352_v45  ;;  %v898_v45 = vmul.f32 %v829_v17, %v786_v25  ;;  %v859_v17 = vpop.permute.xlu0 %858 }
 0x18b   :  { %v377_v61 = vpop.f32.mrb[16].mxu0  ;;  %2814 = vmatprep.mubr.msk.f32.mxu1 %vm578_vm11, %v357_v49 }
 0x18c   :  { %v379_v62 = vpop.f32.mrb[17].mxu0 }
 0x18d   :  { %v790_v62 = vld [vmem:[#allocation2 + $0x1c0] sm:$0xff] }
 0x18e   :  { %2815 = vmatmul.mubr.msk.f32.gmra.mrb[12].mxu1 %vm578_vm11, %v362_v55  ;;  %v902_v19 = vmul.f32 %v849_v54, %v790_v62 }
 0x18f   :  { %v382_v63 = vpop.f32.mrb[18].mxu0  ;;  %2817 = vmatprep.mubr.msk.f32.mxu1 %vm578_vm11, %v367_v57  ;;  %v947_v57 = vmul.f32 1e+30, %v2604_v35 }
 0x190   :  { %v384_v0 = vpop.f32.mrb[19].mxu0 }
 0x191   :  { %v900_v0 = vmul.f32 %v839_v26, %v788_v36  ;;  %v795_v36 = vld [vmem:[#allocation2 + $0x1e8] sm:$0xff] }
 0x192   :  { %2818 = vmatmul.mubr.msk.f32.gmra.mrb[14].mxu1 %vm578_vm11, %v372_v59 }
 0x193   :  { %v387_v2 = vpop.f32.mrb[20].mxu0  ;;  %2820 = vmatprep.mubr.msk.f32.mxu1 %vm578_vm11, %v377_v61  ;;  %v948_v61 = vmul.f32 1e+30, %v2605_v39 }
 0x194   :  { %v389_v3 = vpop.f32.mrb[21].mxu0 }
 0x195   :  { %v2607_v3 = vadd.f32 -1.0, %v790_v62  ;;  %v796_v62 = vld [vmem:[#allocation2 + $0x1f0] sm:$0xff] }
 0x196   :  { %2821 = vmatmul.mubr.msk.f32.gmra.mrb[16].mxu1 %vm578_vm11, %v382_v63  ;;  %v901_v63 = vmul.f32 %v844_v22, %v789_v47  ;;  %v2612_v47 = vadd.f32 -1.0, %v795_v36 }
 0x197   :  { %v392_v4 = vpop.f32.mrb[22].mxu0  ;;  %2823 = vmatprep.mubr.msk.f32.mxu1 %vm578_vm11, %v387_v2  ;;  %v791_v2 = vld [vmem:[#allocation2 + $0x1c8] sm:$0xff]  ;;  %v950_v18 = vmul.f32 1e+30, %v2607_v3 }
 0x198   :  { %v394_v5 = vpop.f32.mrb[23].mxu0  ;;  %v903_v15 = vmul.f32 %v854_v48, %v791_v2  ;;  %v869_v48 = vpop.permute.xlu0 %868 }
 0x19a   :  { %2824 = vmatmul.mubr.msk.f32.gmra.mrb[18].mxu1 %vm578_vm11, %v392_v4 }
 0x19b   :  { %v397_v6 = vpop.f32.mrb[24].mxu0 }
 0x19c   :  { %v399_v7 = vpop.f32.mrb[25].mxu0  ;;  %2826 = vmatprep.mubr.msk.f32.mxu1 %vm578_vm11, %v397_v6  ;;  %v949_v6 = vmul.f32 1e+30, %v2606_v53 }
 0x19d   :  { %v2608_v7 = vadd.f32 -1.0, %v791_v2  ;;  %v955_v2 = vmul.f32 1e+30, %v2612_v47 }
 0x19f   :  { %v402_v8 = vpop.f32.mrb[26].mxu0 }
 0x1a0   :  { %v404_v9 = vpop.f32.mrb[27].mxu0  ;;  %2827 = vmatmul.mubr.msk.f32.gmra.mrb[20].mxu1 %vm578_vm11, %v402_v8 }
 0x1a1   :  { %v864_v9 = vpop.permute.xlu1 %863 }
 0x1a3   :  { %v407_v10 = vpop.f32.mrb[28].mxu0 }
 0x1a4   :  { %v409_v11 = vpop.f32.mrb[29].mxu0  ;;  %2829 = vmatprep.mubr.msk.f32.mxu1 %vm578_vm11, %v407_v10  ;;  %v792_v10 = vld [vmem:[#allocation2 + $0x1d0] sm:$0xff] }
 0x1a5   :  { %v2609_v16 = vadd.f32 -1.0, %v792_v10  ;;  %v904_v35 = vmul.f32 %v859_v17, %v792_v10 }
 0x1a7   :  { %v412_v12 = vpop.f32.mrb[30].mxu0  ;;  %v952_v31 = vmul.f32 1e+30, %v2609_v16 }
 0x1a8   :  { %v414_v13 = vpop.f32.mrb[31].mxu0  ;;  %2830 = vmatmul.mubr.msk.f32.gmra.mrb[22].mxu1 %vm578_vm11, %v412_v12 }
 0x259   :  { %v2810_v30 = vpop.f32.mrb[8].mxu1 }
 0x25a   :  { %v913_v32 = vmul.f32 %v2810_v30, %v897_v24  ;;  %v705_v33 = vpop.f32.mrb[9].mxu1  ;;  %v2610_v24 = vadd.f32 -1.0, %v793_v20 }
 0x25b   :  { %v912_v37 = vmul.f32 %v896_v28, %v705_v33  ;;  %v905_v33 = vmul.f32 %v864_v9, %v793_v20 }
 0x25c   :  { %v3668_v41 = vadd.f32 %v945_v23, %v913_v32  ;;  %v951_v23 = vmul.f32 1e+30, %v2608_v7  ;;  %v794_v32 = vld [vmem:[#allocation2 + $0x1e0] sm:$0xff] }
 0x25d   :  { %v2813_v49 = vpop.f32.mrb[10].mxu1  ;;  %v3670_v52 = vadd.f32 %v944_v27, %v912_v37  ;;  %v874_v37 = vpop.permute.xlu1 %873  ;;  %v2611_v39 = vadd.f32 -1.0, %v794_v32 }
 0x25e   :  { %v715_v55 = vpop.f32.mrb[11].mxu1  ;;  %v980_v56 = vsel %vm976_vm12, %v3668_v41, -inf  ;;  %v915_v58 = vmul.f32 %v2813_v49, %v899_v42 }
 0x25f   :  { %v914_v59 = vmul.f32 %v898_v45, %v715_v55  ;;  %981 = vmax.xlane.f32.xlu1 %v980_v56  ;;  %v977_v60 = vsel %vm976_vm12, %v3670_v52, -inf  ;;  %v953_v45 = vmul.f32 1e+30, %v2610_v24 }
 0x260   :  { %978 = vmax.xlane.f32.xlu0 %v977_v60  ;;  %v3680_v14 = vadd.f32 %v947_v57, %v915_v58  ;;  %v907_v58 = vmul.f32 %v874_v37, %v795_v36  ;;  %v906_v60 = vmul.f32 %v869_v48, %v794_v32 }
 0x261   :  { %v2816_v4 = vpop.f32.mrb[12].mxu1  ;;  %v3676_v5 = vadd.f32 %v946_v44, %v914_v59  ;;  %v954_v59 = vmul.f32 1e+30, %v2611_v39 }
 0x262   :  { %v725_v8 = vpop.f32.mrb[13].mxu1  ;;  %v917_v11 = vmul.f32 %v2816_v4, %v901_v63  ;;  %v986_v28 = vsel %vm976_vm12, %v3680_v14, -inf  ;;  %v2613_v4 = vadd.f32 -1.0, %v796_v62 }
 0x263   :  { %v916_v12 = vmul.f32 %v900_v0, %v725_v8  ;;  %v983_v13 = vsel %vm976_vm12, %v3676_v5, -inf  ;;  %v884_v8 = vpop.permute.xlu1 %883 }
 0x264   :  { %984 = vmax.xlane.f32.xlu0 %v983_v13  ;;  %v3688_v30 = vadd.f32 %v949_v6, %v917_v11  ;;  %v879_v13 = vpop.permute.xlu0 %878 }
 0x265   :  { %v2819_v21 = vpop.f32.mrb[14].mxu1  ;;  %v3682_v22 = vadd.f32 %v948_v61, %v916_v12  ;;  %v797_v61 = vld [vmem:[#allocation2 + $0x1f8] sm:$0xff] }
 0x266   :  { %v919_v25 = vmul.f32 %v2819_v21, %v903_v15  ;;  %v735_v26 = vpop.f32.mrb[15].mxu1  ;;  %v992_v56 = vsel %vm976_vm12, %v3688_v30, -inf  ;;  %v2614_v3 = vadd.f32 -1.0, %v797_v61  ;;  %v909_v17 = vmul.f32 %v884_v8, %v797_v61 }
 0x267   :  { %v918_v27 = vmul.f32 %v902_v19, %v735_v26  ;;  %v989_v29 = vsel %vm976_vm12, %v3682_v22, -inf  ;;  %v908_v19 = vmul.f32 %v879_v13, %v796_v62  ;;  %v894_v32 = vpop.permute.xlu1 %893 }
 0x268   :  { %987 = vmax.xlane.f32.xlu0 %v986_v28  ;;  %990 = vmax.xlane.f32.xlu1 %v989_v29  ;;  %v3692_v53 = vadd.f32 %v951_v23, %v919_v25  ;;  %v957_v16 = vmul.f32 1e+30, %v2614_v3  ;;  %v889_v39 = vpop.permute.xlu0 %888 }
 0x269   :  { %v2822_v42 = vpop.f32.mrb[16].mxu1  ;;  %v3690_v44 = vadd.f32 %v950_v18, %v918_v27  ;;  %v956_v18 = vmul.f32 1e+30, %v2613_v4  ;;  %v799_v27 = vld [vmem:[#allocation2 + $0x208] sm:$0xff] }
 0x26a   :  { %v745_v49 = vpop.f32.mrb[17].mxu1  ;;  %v921_v54 = vmul.f32 %v2822_v42, %v905_v33  ;;  %v998_v7 = vsel %vm976_vm12, %v3692_v53, -inf  ;;  %v2616_v29 = vadd.f32 -1.0, %v799_v27  ;;  %v911_v47 = vmul.f32 %v894_v32, %v799_v27 }
 0x26b   :  { %v920_v55 = vmul.f32 %v904_v35, %v745_v49  ;;  %v995_v57 = vsel %vm976_vm12, %v3690_v44, -inf }
 0x26c   :  { %993 = vmax.xlane.f32.xlu0 %v992_v56  ;;  %996 = vmax.xlane.f32.xlu1 %v995_v57  ;;  %v3704_v12 = vadd.f32 %v953_v45, %v921_v54  ;;  %v959_v45 = vmul.f32 1e+30, %v2616_v29 }
 0x26d   :  { %v2825_v63 = vpop.f32.mrb[18].mxu1  ;;  %v3698_v0 = vadd.f32 %v952_v31, %v920_v55  ;;  %v798_v31 = vld [vmem:[#allocation2 + $0x200] sm:$0xff] }
 0x26e   :  { %v755_v6 = vpop.f32.mrb[19].mxu1  ;;  %v923_v9 = vmul.f32 %v2825_v63, %v907_v58  ;;  %v1004_v21 = vsel %vm976_vm12, %v3704_v12, -inf  ;;  %v2615_v33 = vadd.f32 -1.0, %v798_v31  ;;  %v910_v49 = vmul.f32 %v889_v39, %v798_v31 }
 0x26f   :  { %v922_v10 = vmul.f32 %v906_v60, %v755_v6  ;;  %v1001_v11 = vsel %vm976_vm12, %v3698_v0, -inf }
 0x270   :  { %999 = vmax.xlane.f32.xlu0 %v998_v7  ;;  %1002 = vmax.xlane.f32.xlu1 %v1001_v11  ;;  %v3712_v24 = vadd.f32 %v955_v2, %v923_v9  ;;  %v958_v48 = vmul.f32 1e+30, %v2615_v33 }
 0x271   :  { %v3706_v15 = vadd.f32 %v954_v59, %v922_v10 }
 0x272   :  { %v1010_v35 = vsel %vm976_vm12, %v3712_v24, -inf }
 0x273   :  { %v2828_v20 = vpop.f32.mrb[20].mxu1  ;;  %v1007_v23 = vsel %vm976_vm12, %v3706_v15, -inf }
 0x274   :  { %v925_v25 = vmul.f32 %v2828_v20, %v909_v17  ;;  %v765_v26 = vpop.f32.mrb[21].mxu1  ;;  %1005 = vmax.xlane.f32.xlu0 %v1004_v21  ;;  %1008 = vmax.xlane.f32.xlu1 %v1007_v23 }
 0x275   :  { %v924_v28 = vmul.f32 %v908_v19, %v765_v26 }
 0x276   :  { %v3718_v37 = vadd.f32 %v957_v16, %v925_v25 }
 0x277   :  { %v3716_v36 = vadd.f32 %v956_v18, %v924_v28 }
 0x278   :  { %1011 = vmax.xlane.f32.xlu0 %v1010_v35  ;;  %v1016_v55 = vsel %vm976_vm12, %v3718_v37, -inf }
 0x279   :  { %v1013_v42 = vsel %vm976_vm12, %v3716_v36, -inf }
 0x27a   :  { %1014 = vmax.xlane.f32.xlu1 %v1013_v42 }
 0x27b   :  { %v2831_v54 = vpop.f32.mrb[22].mxu1 }
 0x27c   :  { %v927_v56 = vmul.f32 %v2831_v54, %v911_v47  ;;  %v775_v57 = vpop.f32.mrb[23].mxu1  ;;  %1017 = vmax.xlane.f32.xlu0 %v1016_v55 }
 0x27d   :  { %v926_v58 = vmul.f32 %v910_v49, %v775_v57 }
 0x27e   :  { %v3724_v59 = vadd.f32 %v959_v45, %v927_v56 }
 0x27f   :  { %v3726_v60 = vadd.f32 %v958_v48, %v926_v58 }
 0x280   :  { %v1022_v61 = vsel %vm976_vm12, %v3724_v59, -inf }
 0x281   :  { %1023 = vmax.xlane.f32.xlu0 %v1022_v61  ;;  %v1019_v62 = vsel %vm976_vm12, %v3726_v60, -inf }
 0x282   :  { %1020 = vmax.xlane.f32.xlu1 %v1019_v62 }
 0x2ec   :  { %v982_v63 = vpop.xlane.xlu1 %981 }
 0x2ed   :  { %v1026_v2 = vsub.f32 %v3668_v41, %v982_v63  ;;  %v979_v3 = vpop.xlane.xlu0 %978 }
 0x2ee   :  { %v1025_v4 = vsub.f32 %v3670_v52, %v979_v3 }
 0x2ef   :  { %v1043_v6 = vmul.f32 1.442695, %v1026_v2 }
 0x2f0   :  { %v1041_v7 = vmul.f32 1.442695, %v1025_v4 }
 0x2f1   :  { %3244 = vpow2.f32 %v1043_v6  ;;  %v985_v8 = vpop.xlane.xlu0 %984 }
 0x2f2   :  { %3246 = vpow2.f32 %v1041_v7  ;;  %v1027_v9 = vsub.f32 %v3676_v5, %v985_v8 }
 0x2f4   :  { %v1045_v10 = vmul.f32 1.442695, %v1027_v9 }
 0x2f5   :  { %v991_v11 = vpop.xlane.xlu1 %990  ;;  %v988_v13 = vpop.xlane.xlu0 %987 }
 0x2f6   :  { %3248 = vpow2.f32 %v1045_v10  ;;  %v1029_v16 = vsub.f32 %v3682_v22, %v991_v11  ;;  %v1028_v17 = vsub.f32 %v3680_v14, %v988_v13 }
 0x2f8   :  { %v1049_v18 = vmul.f32 1.442695, %v1029_v16  ;;  %v1047_v41 = vmul.f32 1.442695, %v1028_v17 }
 0x2f9   :  { %v997_v19 = vpop.xlane.xlu1 %996  ;;  %v994_v20 = vpop.xlane.xlu0 %993 }
 0x2fa   :  { %3250 = vpow2.f32 %v1049_v18  ;;  %v1031_v52 = vsub.f32 %v3690_v44, %v997_v19  ;;  %v1030_v21 = vsub.f32 %v3688_v30, %v994_v20 }
 0x2fb   :  { %v3739_v23 = vpop.eup %3244  ;;  %3252 = vpow2.f32 %v1047_v41 }
 0x2fc   :  { %v3741_v5 = vpop.eup %3246  ;;  %v1053_v25 = vmul.f32 1.442695, %v1031_v52  ;;  %v1051_v26 = vmul.f32 1.442695, %v1030_v21  ;;  %v1076_v22 = vsel %vm976_vm12, %v3739_v23, 0.0  ;;  %v1864_v21 = vld [vmem:[#allocation2 + $0x2f8] sm:$0xff] }
 0x2fd   :  { %1077 = vadd.xlane.f32.xlu0 %v1076_v22  ;;  %v1003_v14 = vpop.xlane.xlu1 %1002  ;;  %v1000_v27 = vpop.xlane.xlu0 %999  ;;  %v1073_v28 = vsel %vm976_vm12, %v3741_v5, 0.0  ;;  %v1865_v22 = vld [vmem:[#allocation2 + $0x300] sm:$0xff] }
 0x2fe   :  { %3254 = vpow2.f32 %v1053_v25  ;;  %v1033_v44 = vsub.f32 %v3698_v0, %v1003_v14  ;;  %v1032_v30 = vsub.f32 %v3692_v53, %v1000_v27  ;;  %1074 = vadd.xlane.f32.xlu1 %v1073_v28  ;;  %v2137_v25 = vld [vmem:[#allocation2 + $0x348] sm:$0xff]  ;;  %v1358_v14 = vld [vmem:[#allocation2 + $0x290] sm:$0xff] }
 0x2ff   :  { %3256 = vpow2.f32 %v1051_v26  ;;  %v2138_v26 = vld [vmem:[#allocation2 + $0x350] sm:$0xff]  ;;  %2864 = vmatprep.subr.mxu0 %v1358_v14 }
 0x300   :  { %v3749_v29 = vpop.eup %3248  ;;  %v1057_v31 = vmul.f32 1.442695, %v1033_v44  ;;  %v1055_v32 = vmul.f32 1.442695, %v1032_v30  ;;  %2865 = vmatpush3.msra.mxu0 %v1358_v14 }
 0x301   :  { %v1006_v33 = vpop.xlane.xlu0 %1005  ;;  %v1079_v35 = vsel %vm976_vm12, %v3749_v29, 0.0  ;;  %v1009_v39 = vpop.xlane.xlu1 %1008 }
 0x302   :  { %3258 = vpow2.f32 %v1057_v31  ;;  %v1034_v42 = vsub.f32 %v3704_v12, %v1006_v33  ;;  %1080 = vadd.xlane.f32.xlu1 %v1079_v35  ;;  %v1035_v47 = vsub.f32 %v3706_v15, %v1009_v39 }
 0x303   :  { %3260 = vpow2.f32 %v1055_v32 }
 0x304   :  { %v3754_v45 = vpop.eup %3250  ;;  %v1059_v0 = vmul.f32 1.442695, %v1034_v42  ;;  %v1061_v58 = vmul.f32 1.442695, %v1035_v47 }
 0x305   :  { %v3756_v53 = vpop.eup %3252  ;;  %v1012_v48 = vpop.xlane.xlu0 %1011  ;;  %v1085_v49 = vsel %vm976_vm12, %v3754_v45, 0.0 }
 0x306   :  { %v1036_v54 = vsub.f32 %v3712_v24, %v1012_v48  ;;  %1086 = vadd.xlane.f32.xlu1 %v1085_v49  ;;  %v1082_v55 = vsel %vm976_vm12, %v3756_v53, 0.0  ;;  %3262 = vpow2.f32 %v1059_v0 }
 0x307   :  { %1083 = vadd.xlane.f32.xlu0 %v1082_v55  ;;  %v1015_v10 = vpop.xlane.xlu1 %1014 }
 0x308   :  { %v3764_v12 = vpop.eup %3254  ;;  %v1063_v56 = vmul.f32 1.442695, %v1036_v54  ;;  %v1037_v13 = vsub.f32 %v3716_v36, %v1015_v10 }
 0x309   :  { %v3766_v57 = vpop.eup %3256  ;;  %v1091_v15 = vsel %vm976_vm12, %v3764_v12, 0.0  ;;  %v1018_v11 = vpop.xlane.xlu0 %1017 }
 0x30a   :  { %3264 = vpow2.f32 %v1063_v56  ;;  %1092 = vadd.xlane.f32.xlu1 %v1091_v15  ;;  %v1088_v24 = vsel %vm976_vm12, %v3766_v57, 0.0  ;;  %v1065_v17 = vmul.f32 1.442695, %v1037_v13  ;;  %v1038_v34 = vsub.f32 %v3718_v37, %v1018_v11 }
 0x30b   :  { %1089 = vadd.xlane.f32.xlu0 %v1088_v24  ;;  %3266 = vpow2.f32 %v1061_v58 }
 0x30c   :  { %v3772_v61 = vpop.eup %3258  ;;  %3268 = vpow2.f32 %v1065_v17  ;;  %v1067_v38 = vmul.f32 1.442695, %v1038_v34 }
 0x30d   :  { %v3774_v62 = vpop.eup %3260  ;;  %v1097_v63 = vsel %vm976_vm12, %v3772_v61, 0.0 }
 0x30e   :  { %1098 = vadd.xlane.f32.xlu1 %v1097_v63  ;;  %v1094_v2 = vsel %vm976_vm12, %v3774_v62, 0.0  ;;  %v1024_v41 = vpop.xlane.xlu0 %1023 }
 0x30f   :  { %1095 = vadd.xlane.f32.xlu0 %v1094_v2  ;;  %v1021_v16 = vpop.xlane.xlu1 %1020  ;;  %v1040_v19 = vsub.f32 %v3724_v59, %v1024_v41 }
 0x310   :  { %v3780_v3 = vpop.eup %3262  ;;  %v1039_v18 = vsub.f32 %v3726_v60, %v1021_v16 }
 0x311   :  { %v1100_v4 = vsel %vm976_vm12, %v3780_v3, 0.0  ;;  %v1071_v52 = vmul.f32 1.442695, %v1040_v19 }
 0x312   :  { %v1069_v20 = vmul.f32 1.442695, %v1039_v18 }
 0x313   :  { %1101 = vadd.xlane.f32.xlu0 %v1100_v4 }
 0x314   :  { %v3784_v6 = vpop.eup %3264  ;;  %3270 = vpow2.f32 %v1069_v20 }
 0x315   :  { %v1106_v7 = vsel %vm976_vm12, %v3784_v6, 0.0  ;;  %v3788_v8 = vpop.eup %3266  ;;  %3272 = vpow2.f32 %v1071_v52 }
 0x316   :  { %v1103_v9 = vsel %vm976_vm12, %v3788_v8, 0.0  ;;  %3274 = vpow2.f32 %v1067_v38 }
 0x317   :  { %1107 = vadd.xlane.f32.xlu0 %v1106_v7 }
 0x31b   :  { %1104 = vadd.xlane.f32.xlu0 %v1103_v9 }
 0x31f   :  { %3235 = vrot.lane.b32.xlu1 %v3234_v40, %s3339_s2  ;;  %v3802_v40 = vpop.eup %3268 }
 0x320   :  { %v1109_v36 = vsel %vm976_vm12, %v3802_v40, 0.0  ;;  %v3806_v60 = vpop.eup %3270 }
 0x321   :  { %v1115_v46 = vsel %vm976_vm12, %v3806_v60, 0.0  ;;  %v3810_v50 = vpop.eup %3272 }
 0x322   :  { %v3814_v37 = vpop.eup %3274 }
 0x323   :  { %v1112_v59 = vsel %vm976_vm12, %v3814_v37, 0.0 }
 0x331   :  { %3240 = vrot.lane.b32.xlu0 %v3239_v51, %s3339_s2  ;;  %v1118_v51 = vsel %vm976_vm12, %v3810_v50, 0.0 }
 0x343   :  { %1110 = vadd.xlane.f32.xlu1 %v1109_v36 }
 0x347   :  { %1116 = vadd.xlane.f32.xlu1 %v1115_v46 }
 0x34b   :  { %1119 = vadd.xlane.f32.xlu1 %v1118_v51 }
 0x350   :  { %1113 = vadd.xlane.f32.xlu0 %v1112_v59 }
 0x35c   :  { %1951 = vperm.xlu1 %3233, %v1864_v21  }
 0x360   :  { %2224 = vperm.xlu1 %3233, %v2137_v25  }
 0x364   :  { %2229 = vperm.xlu1 %3233, %v2138_v26  }
 0x366   :  { %1956 = vperm.xlu0 %3232, %v1865_v22  }
 0x38a   :  { %v1078_v44 = vpop.xlane.xlu0 %1077 }
 0x38b   :  { %v1075_v27 = vpop.xlane.xlu1 %1074 }
 0x38c   :  { %3276 = vrcp.f32 %v1075_v27 }
 0x38d   :  { %3278 = vrcp.f32 %v1078_v44 }
 0x38f   :  { %v1081_v28 = vpop.xlane.xlu1 %1080 }
 0x390   :  { %3280 = vrcp.f32 %v1081_v28 }
 0x393   :  { %v1087_v30 = vpop.xlane.xlu1 %1086 }
 0x394   :  { %v1084_v31 = vpop.xlane.xlu0 %1083 }
 0x395   :  { %3282 = vrcp.f32 %v1084_v31 }
 0x396   :  { %v3277_v32 = vpop.eup %3276  ;;  %3284 = vrcp.f32 %v1087_v30 }
 0x397   :  { %v1093_v33 = vpop.xlane.xlu1 %1092  ;;  %v1137_v35 = vmul.f32 %v3277_v32, %v3741_v5  ;;  %v3279_v2 = vpop.eup %3278 }
 0x398   :  { %v1090_v39 = vpop.xlane.xlu0 %1089  ;;  %v1138_v7 = vmul.f32 %v3279_v2, %v3739_v23 }
 0x399   :  { %2840 = vmatprep.mubr.msk.f32.mxu1 %vm976_vm12, %v1137_v35  ;;  %3286 = vrcp.f32 %v1090_v39 }
 0x39a   :  { %3288 = vrcp.f32 %v1093_v33  ;;  %v3281_v4 = vpop.eup %3280 }
 0x39b   :  { %v1099_v42 = vpop.xlane.xlu1 %1098  ;;  %v1139_v10 = vmul.f32 %v3281_v4, %v3749_v29 }
 0x39c   :  { %v1096_v0 = vpop.xlane.xlu0 %1095 }
 0x39d   :  { %3290 = vrcp.f32 %v1096_v0  ;;  %v1584_v0 = vld [vmem:[%s3910_s3] sm:$0xff] }
 0x39e   :  { %3292 = vrcp.f32 %v1099_v42 }
 0x39f   :  { %v3236_v47 = vpop.permute.xlu1 %3235  ;;  %v3283_v9 = vpop.eup %3282 }
 0x3a0   :  { %v3238_v48 = vunpack.i.h.bf16 %v3236_v47  ;;  %v3237_v49 = vunpack.i.l.bf16 %v3236_v47  ;;  %v1102_v54 = vpop.xlane.xlu0 %1101  ;;  %v3285_v11 = vpop.eup %3284  ;;  %v1140_v13 = vmul.f32 %v3283_v9, %v3756_v53  ;;  %v1553_v47 = vld [vmem:[#allocation2 + $0x218] sm:$0xff]  ;;  %v1556_v9 = vld [vmem:[#allocation2 + $0x230] sm:$0xff] }
 0x3a1   :  { %3294 = vrcp.f32 %v1102_v54  ;;  %v1141_v17 = vmul.f32 %v3285_v11, %v3754_v45 }
 0x3a2   :  { %v3109_v55 = vpack.c.bf16 %v3238_v48, %v3237_v49  ;;  %v1552_v48 = vld [vmem:[#allocation2 + $0x210] sm:$0xff] }
 0x3a3   :  { %v3287_v16 = vpop.eup %3286 }
 0x3a4   :  { %v1108_v56 = vpop.xlane.xlu0 %1107  ;;  %3110 = vmatprep.subr.bf16.mxu1 %v3109_v55  ;;  %v3289_v18 = vpop.eup %3288  ;;  %v1142_v23 = vmul.f32 %v3287_v16, %v3766_v57 }
 0x3a5   :  { %3112 = vmatpush3.bf16.msra.mxu1 %v3109_v55  ;;  %v1143_v41 = vmul.f32 %v3289_v18, %v3764_v12  ;;  %v1559_v18 = vld [vmem:[#allocation2 + $0x248] sm:$0xff] }
 0x3a7   :  { %v3291_v29 = vpop.eup %3290 }
 0x3a8   :  { %v1105_v58 = vpop.xlane.xlu0 %1104  ;;  %v3293_v19 = vpop.eup %3292  ;;  %v1144_v53 = vmul.f32 %v3291_v29, %v3774_v62 }
 0x3a9   :  { %3296 = vrcp.f32 %v1105_v58  ;;  %v1145_v45 = vmul.f32 %v3293_v19, %v3772_v61  ;;  %v1555_v58 = vld [vmem:[#allocation2 + $0x228] sm:$0xff] }
 0x3aa   :  { %3298 = vrcp.f32 %v1108_v56 }
 0x3ab   :  { %v3295_v20 = vpop.eup %3294 }
 0x3ac   :  { %v3241_v15 = vpop.permute.xlu0 %3240  ;;  %v1146_v57 = vmul.f32 %v3295_v20, %v3780_v3 }
 0x3ad   :  { %v3243_v5 = vunpack.i.h.bf16 %v3241_v15  ;;  %v3242_v24 = vunpack.i.l.bf16 %v3241_v15  ;;  %v1554_v15 = vld [vmem:[#allocation2 + $0x220] sm:$0xff] }
 0x3af   :  { %v3113_v63 = vpack.c.bf16 %v3243_v5, %v3242_v24 }
 0x3b1   :  { %3114 = vmatprep.subr.bf16.mxu1 %v3113_v63 }
 0x3b2   :  { %3116 = vmatpush3.bf16.msra.mxu1 %v3113_v63 }
 0x3b3   :  { %v3297_v52 = vpop.eup %3296 }
 0x3b4   :  { %v3299_v34 = vpop.eup %3298  ;;  %v1147_v12 = vmul.f32 %v3297_v52, %v3788_v8  ;;  %v1560_v52 = vld [vmem:[#allocation2 + $0x250] sm:$0xff] }
 0x3b5   :  { %2841 = vmatmul.mubr.msk.f32.vlgmr.msra.gmra.mrb[24].mxu1 %vm976_vm12, %v1138_v7  ;;  %v1148_v38 = vmul.f32 %v3299_v34, %v3784_v6  ;;  %v1557_v7 = vld [vmem:[#allocation2 + $0x238] sm:$0xff] }
 0x3b6   :  { %2843 = vmatprep.mubr.msk.f32.mxu1 %vm976_vm12, %v1139_v10 }
 0x3b9   :  { %2844 = vmatmul.mubr.msk.f32.gmra.mrb[26].mxu1 %vm976_vm12, %v1140_v13 }
 0x3ba   :  { %2846 = vmatprep.mubr.msk.f32.mxu1 %vm976_vm12, %v1141_v17 }
 0x3bd   :  { %2847 = vmatmul.mubr.msk.f32.gmra.mrb[28].mxu1 %vm976_vm12, %v1142_v23  ;;  %v1558_v23 = vld [vmem:[#allocation2 + $0x240] sm:$0xff] }
 0x3be   :  { %2849 = vmatprep.mubr.msk.f32.mxu1 %vm976_vm12, %v1143_v41 }
 0x3c1   :  { %2850 = vmatmul.mubr.msk.f32.gmra.mrb[30].mxu1 %vm976_vm12, %v1144_v53 }
 0x3c2   :  { %2852 = vmatprep.mubr.msk.f32.mxu1 %vm976_vm12, %v1145_v45  ;;  %v1561_v45 = vld [vmem:[#allocation2 + $0x258] sm:$0xff] }
 0x3c5   :  { %2853 = vmatmul.mubr.msk.f32.gmra.mrb[32].mxu1 %vm976_vm12, %v1146_v57 }
 0x3c6   :  { %2855 = vmatprep.mubr.msk.f32.mxu1 %vm976_vm12, %v1147_v12 }
 0x3c9   :  { %2856 = vmatmul.mubr.msk.f32.gmra.mrb[34].mxu1 %vm976_vm12, %v1148_v38 }
 0x3d0   :  { %v1111_v62 = vpop.xlane.xlu1 %1110 }
 0x3d1   :  { %3300 = vrcp.f32 %v1111_v62 }
 0x3d4   :  { %v1117_v61 = vpop.xlane.xlu1 %1116 }
 0x3d5   :  { %3302 = vrcp.f32 %v1117_v61  ;;  %v1563_v61 = vld [vmem:[#allocation2 + $0x268] sm:$0xff] }
 0x3d8   :  { %v1120_v51 = vpop.xlane.xlu1 %1119 }
 0x3db   :  { %v3301_v36 = vpop.eup %3300 }
 0x3dc   :  { %v1149_v46 = vmul.f32 %v3301_v36, %v3802_v40  ;;  %v1562_v36 = vld [vmem:[#allocation2 + $0x260] sm:$0xff] }
 0x3dd   :  { %v1114_v3 = vpop.xlane.xlu0 %1113 }
 0x3de   :  { %3304 = vrcp.f32 %v1114_v3  ;;  %2858 = vmatprep.mubr.msk.f32.mxu1 %vm976_vm12, %v1149_v46 }
 0x3df   :  { %3306 = vrcp.f32 %v1120_v51  ;;  %v3303_v8 = vpop.eup %3302 }
 0x3e0   :  { %v1151_v25 = vmul.f32 %v3303_v8, %v3806_v60 }
 0x3e8   :  { %v3305_v59 = vpop.eup %3304 }
 0x3e9   :  { %v1150_v21 = vmul.f32 %v3305_v59, %v3814_v37  ;;  %v3307_v6 = vpop.eup %3306 }
 0x3ea   :  { %v1152_v40 = vmul.f32 %v3307_v6, %v3810_v50  ;;  %v1565_v6 = vld [vmem:[#allocation2 + $0x278] sm:$0xff] }
 0x3eb   :  { %2859 = vmatmul.mubr.msk.f32.gmra.mrb[36].mxu1 %vm976_vm12, %v1150_v21 }
 0x3ec   :  { %2861 = vmatprep.mubr.msk.f32.mxu1 %vm976_vm12, %v1151_v25  ;;  %v1564_v25 = vld [vmem:[#allocation2 + $0x270] sm:$0xff] }
 0x3ef   :  { %2862 = vmatmul.mubr.msk.f32.gmra.mrb[38].mxu1 %vm976_vm12, %v1152_v40 }
 0x3f0   :  { %2922 = vmatprep.mubr.f32.mxu1 %v1584_v0  ;;  %v1585_v0 = vld [vmem:[%s3910_s3 + $0x8] sm:$0xff] }
 0x488   :  { %v2842_v26 = vpop.f32.mrb[24].mxu1 }
 0x489   :  { %v1279_v22 = vpop.f32.mrb[25].mxu1 }
 0x48a   :  { %2866 = vmatprep.mubr.msk.f32.mxu0 %vm578_vm11, %v1279_v22 }
 0x48b   :  { %2867 = vmatmul.mubr.msk.f32.vlgmr.msra.gmra.mrb[32].mxu0 %vm578_vm11, %v2842_v26 }
 0x48c   :  { %v2845_v14 = vpop.f32.mrb[26].mxu1 }
 0x48d   :  { %v1289_v27 = vpop.f32.mrb[27].mxu1 }
 0x48e   :  { %2869 = vmatprep.mubr.msk.f32.mxu0 %vm578_vm11, %v1289_v27  ;;  %v1567_v27 = vld [vmem:[#allocation2 + $0x288] sm:$0xff] }
 0x48f   :  { %2870 = vmatmul.mubr.msk.f32.gmra.mrb[34].mxu0 %vm578_vm11, %v2845_v14 }
 0x490   :  { %v2848_v60 = vpop.f32.mrb[28].mxu1 }
 0x491   :  { %v1299_v37 = vpop.f32.mrb[29].mxu1 }
 0x492   :  { %2872 = vmatprep.mubr.msk.f32.mxu0 %vm578_vm11, %v1299_v37 }
 0x493   :  { %2873 = vmatmul.mubr.msk.f32.gmra.mrb[36].mxu0 %vm578_vm11, %v2848_v60  ;;  %v1566_v60 = vld [vmem:[#allocation2 + $0x280] sm:$0xff] }
 0x494   :  { %v2851_v50 = vpop.f32.mrb[30].mxu1 }
 0x495   :  { %v1309_v28 = vpop.f32.mrb[31].mxu1 }
 0x496   :  { %2875 = vmatprep.mubr.msk.f32.mxu0 %vm578_vm11, %v1309_v28 }
 0x497   :  { %2876 = vmatmul.mubr.msk.f32.gmra.mrb[38].mxu0 %vm578_vm11, %v2851_v50 }
 0x498   :  { %v2854_v44 = vpop.f32.mrb[32].mxu1 }
 0x499   :  { %v1319_v30 = vpop.f32.mrb[33].mxu1 }
 0x49a   :  { %2878 = vmatprep.mubr.msk.f32.mxu0 %vm578_vm11, %v1319_v30  ;;  %v1673_v30 = vld [vmem:[#allocation2 + $0x298] sm:$0xff] }
 0x49b   :  { %2879 = vmatmul.mubr.msk.f32.gmra.mrb[40].mxu0 %vm578_vm11, %v2854_v44 }
 0x49c   :  { %v2857_v31 = vpop.f32.mrb[34].mxu1 }
 0x49d   :  { %v1329_v32 = vpop.f32.mrb[35].mxu1 }
 0x49e   :  { %2881 = vmatprep.mubr.msk.f32.mxu0 %vm578_vm11, %v1329_v32 }
 0x49f   :  { %2882 = vmatmul.mubr.msk.f32.gmra.mrb[42].mxu0 %vm578_vm11, %v2857_v31  ;;  %v1674_v31 = vld [vmem:[#allocation2 + $0x2a0] sm:$0xff] }
 0x4be   :  { %v2860_v33 = vpop.f32.mrb[36].mxu1 }
 0x4bf   :  { %v1339_v35 = vpop.f32.mrb[37].mxu1 }
 0x4c0   :  { %2884 = vmatprep.mubr.msk.f32.mxu0 %vm578_vm11, %v1339_v35  ;;  %v3149_v35 = vpack.c.bf16 %v1674_v31, %v1673_v30  ;;  %v2669_v31 = vld [vmem:[#allocation2 + $0x358] ss:$0 sm:$0xff] }
 0x4c1   :  { %2885 = vmatmul.mubr.msk.f32.gmra.mrb[44].mxu0 %vm578_vm11, %v2860_v33 }
 0x4c2   :  { %v2863_v39 = vpop.f32.mrb[38].mxu1 }
 0x4c3   :  { %v1349_v42 = vpop.f32.mrb[39].mxu1 }
 0x4c4   :  { %2887 = vmatprep.mubr.msk.f32.mxu0 %vm578_vm11, %v1349_v42  ;;  %v1676_v42 = vld [vmem:[#allocation2 + $0x2b0] sm:$0xff] }
 0x4c5   :  { %2888 = vmatmul.mubr.msk.f32.gmra.mrb[46].mxu0 %vm578_vm11, %v2863_v39  ;;  %v1675_v39 = vld [vmem:[#allocation2 + $0x2a8] sm:$0xff] }
 0x55e   :  { %v2868_v49 = vpop.f32.mrb[32].mxu0 }
 0x55f   :  { %v1569_v54 = vmul.f32 %v2868_v49, %v1553_v47  ;;  %v1473_v55 = vpop.f32.mrb[33].mxu0  ;;  %v1586_v47 = vld [vmem:[%s3910_s3 + $0x10] sm:$0xff]  ;;  %v1587_v49 = vld [vmem:[%s3910_s3 + $0x18] sm:$0xff] }
 0x560   :  { %v1568_v56 = vmul.f32 %v1552_v48, %v1473_v55  ;;  %v3153_v48 = vpack.c.bf16 %v1676_v42, %v1675_v39  ;;  %v1775_v55 = vld [vmem:[#allocation2 + $0x2c0] sm:$0xff] }
 0x562   :  { %v3117_v5 = vpack.c.bf16 %v1569_v54, %v1568_v56  ;;  %v2871_v24 = vpop.f32.mrb[34].mxu0  ;;  %v1774_v54 = vld [vmem:[#allocation2 + $0x2b8] sm:$0xff] }
 0x563   :  { %v1571_v63 = vmul.f32 %v2871_v24, %v1555_v58  ;;  %v1483_v2 = vpop.f32.mrb[35].mxu0  ;;  %v3157_v56 = vpack.c.bf16 %v1775_v55, %v1774_v54  ;;  %v1776_v58 = vld [vmem:[#allocation2 + $0x2c8] sm:$0xff]  ;;  %v2061_v54 = vld [vmem:[#allocation2 + $0x310] sm:$0x3] }
 0x564   :  { %v1570_v4 = vmul.f32 %v1554_v15, %v1483_v2  ;;  %3118 = vmatprep.subr.bf16.mxu1 %v3117_v5  ;;  %v1777_v15 = vld [vmem:[#allocation2 + $0x2d0] sm:$0xff] }
 0x565   :  { %3120 = vmatpush3.bf16.msra.mxu1 %v3117_v5 }
 0x566   :  { %v3121_v10 = vpack.c.bf16 %v1571_v63, %v1570_v4  ;;  %v2874_v11 = vpop.f32.mrb[36].mxu0  ;;  %v3161_v63 = vpack.c.bf16 %v1777_v15, %v1776_v58  ;;  %v2419_v15 = vld [vmem:[#allocation2 + $0x360] sm:$0x3] }
 0x567   :  { %v1573_v13 = vmul.f32 %v2874_v11, %v1557_v7  ;;  %v1493_v16 = vpop.f32.mrb[37].mxu0  ;;  %v2139_v11 = vld [vmem:[#allocation2 + $0x318] sm:$0xff] }
 0x568   :  { %v1572_v17 = vmul.f32 %v1556_v9, %v1493_v16  ;;  %3122 = vmatprep.subr.bf16.mxu1 %v3121_v10  ;;  %2993 = vmatprep.mubr.msk.f32.mxu0 %vm976_vm12, %v2139_v11  ;;  %v2140_v16 = vld [vmem:[#allocation2 + $0x320] sm:$0xff] }
 0x569   :  { %3124 = vmatpush3.bf16.msra.mxu1 %v3121_v10  ;;  %v1866_v10 = vld [vmem:[#allocation2 + $0x2d8] sm:$0xff] }
 0x56a   :  { %v3125_v29 = vpack.c.bf16 %v1573_v13, %v1572_v17  ;;  %v2877_v41 = vpop.f32.mrb[38].mxu0  ;;  %v1867_v13 = vld [vmem:[#allocation2 + $0x2e0] sm:$0xff]  ;;  %v1961_v17 = vld [vmem:[#allocation2 + $0x2e8] sm:$0xff] }
 0x56b   :  { %v1575_v19 = vmul.f32 %v2877_v41, %v1559_v18  ;;  %v1503_v53 = vpop.f32.mrb[39].mxu0  ;;  %v2234_v18 = vld [vmem:[#allocation2 + $0x328] sm:$0xff] }
 0x56c   :  { %v1574_v20 = vmul.f32 %v1558_v23, %v1503_v53  ;;  %3126 = vmatprep.subr.bf16.mxu1 %v3125_v29 }
 0x56d   :  { %3128 = vmatpush3.bf16.msra.mxu1 %v3125_v29 }
 0x56e   :  { %v3129_v57 = vpack.c.bf16 %v1575_v19, %v1574_v20  ;;  %v2880_v34 = vpop.f32.mrb[40].mxu0 }
 0x56f   :  { %v1577_v12 = vmul.f32 %v2880_v34, %v1561_v45  ;;  %v1513_v38 = vpop.f32.mrb[41].mxu0  ;;  %v2235_v34 = vld [vmem:[#allocation2 + $0x330] sm:$0xff] }
 0x570   :  { %v1576_v62 = vmul.f32 %v1560_v52, %v1513_v38  ;;  %3130 = vmatprep.subr.bf16.mxu1 %v3129_v57  ;;  %v2319_v38 = vld [vmem:[#allocation2 + $0x338] sm:$0xff] }
 0x571   :  { %3132 = vmatpush3.bf16.msra.mxu1 %v3129_v57  ;;  %v1962_v57 = vld [vmem:[#allocation2 + $0x2f0] sm:$0xff] }
 0x572   :  { %v3133_v46 = vpack.c.bf16 %v1577_v12, %v1576_v62  ;;  %v2883_v51 = vpop.f32.mrb[42].mxu0 }
 0x573   :  { %v1579_v3 = vmul.f32 %v2883_v51, %v1563_v61  ;;  %v1523_v8 = vpop.f32.mrb[43].mxu0  ;;  %v1952_v51 = vpop.permute.xlu1 %1951 }
 0x574   :  { %v1578_v59 = vmul.f32 %v1562_v36, %v1523_v8  ;;  %3134 = vmatprep.subr.bf16.mxu1 %v3133_v46 }
 0x575   :  { %3136 = vmatpush3.bf16.msra.mxu1 %v3133_v46  ;;  %v2320_v46 = vld [vmem:[#allocation2 + $0x340] sm:$0xff] }
 0x576   :  { %v3137_v21 = vpack.c.bf16 %v1579_v3, %v1578_v59  ;;  %v1957_v3 = vpop.permute.xlu0 %1956 }
 0x578   :  { %3138 = vmatprep.subr.bf16.mxu1 %v3137_v21 }
 0x579   :  { %3140 = vmatpush3.bf16.msra.mxu1 %v3137_v21 }
 0x594   :  { %v2886_v40 = vpop.f32.mrb[44].mxu0 }
 0x595   :  { %v1581_v26 = vmul.f32 %v2886_v40, %v1565_v6  ;;  %v1533_v22 = vpop.f32.mrb[45].mxu0  ;;  %v2225_v40 = vpop.permute.xlu1 %2224 }
 0x596   :  { %v1580_v14 = vmul.f32 %v1564_v25, %v1533_v22  ;;  %v2661_v25 = vld [vmem:[#allocation2 + $0x308] ss:$0 sm:$0xff] }
 0x598   :  { %v3141_v37 = vpack.c.bf16 %v1581_v26, %v1580_v14  ;;  %v2889_v50 = vpop.f32.mrb[46].mxu0 }
 0x599   :  { %v1583_v28 = vmul.f32 %v2889_v50, %v1567_v27  ;;  %v1543_v44 = vpop.f32.mrb[47].mxu0 }
 0x59a   :  { %v1582_v32 = vmul.f32 %v1566_v60, %v1543_v44  ;;  %3142 = vmatprep.subr.bf16.mxu1 %v3141_v37 }
 0x59b   :  { %3144 = vmatpush3.bf16.msra.mxu1 %v3141_v37 }
 0x59c   :  { %v3145_v33 = vpack.c.bf16 %v1583_v28, %v1582_v32 }
 0x59e   :  { %3146 = vmatprep.subr.bf16.mxu1 %v3145_v33 }
 0x59f   :  { %3148 = vmatpush3.bf16.msra.mxu1 %v3145_v33 }
 0x5a0   :  { %3150 = vmatprep.subr.bf16.mxu1 %v3149_v35 }
 0x5a2   :  { %2923 = vmatmul.mubr.f32.vlgmr.msra.gmra.mrb[40].mxu1 %v1585_v0 }
 0x5a3   :  { %2925 = vmatprep.mubr.f32.mxu1 %v1586_v47  ;;  %3152 = vmatpush3.bf16.msra.mxu1 %v3149_v35 }
 0x5a4   :  { %3154 = vmatprep.subr.bf16.mxu1 %v3153_v48 }
 0x5a6   :  { %2926 = vmatmul.mubr.f32.gmra.mrb[42].mxu1 %v1587_v49 }
 0x5a7   :  { %3156 = vmatpush3.bf16.msra.mxu1 %v3153_v48 }
 0x5a8   :  { %3158 = vmatprep.subr.bf16.mxu1 %v3157_v56 }
 0x675   :  { %v2924_v5 = vpop.f32.mrb[40].mxu1 }
 0x676   :  { %v1654_v24 = vpop.f32.mrb[41].mxu1 }
 0x677   :  { %v3165_v2 = vpack.c.bf16 %v2924_v5, %v1654_v24  ;;  %2936 = vmatprep.mubr.msk.f32.mxu1 %vm976_vm12, %v1654_v24 }
 0x678   :  { %2937 = vmatmul.mubr.msk.f32.vlgmr.msra.gmra.mrb[44].mxu1 %vm976_vm12, %v2924_v5 }
 0x679   :  { %3160 = vmatpush3.bf16.msra.mxu1 %v3157_v56  ;;  %v2927_v4 = vpop.f32.mrb[42].mxu1  ;;  %3185 = vmatprep.subr.bf16.mxu0 %v3165_v2 }
 0x67a   :  { %v1664_v7 = vpop.f32.mrb[43].mxu1  ;;  %3187 = vmatpush3.bf16.msra.mxu0 %v3165_v2  ;;  %3162 = vmatprep.subr.bf16.mxu1 %v3161_v63 }
 0x67b   :  { %v3169_v9 = vpack.c.bf16 %v2927_v4, %v1664_v7  ;;  %2939 = vmatprep.mubr.msk.f32.mxu1 %vm976_vm12, %v1664_v7 }
 0x67c   :  { %2940 = vmatmul.mubr.msk.f32.gmra.mrb[46].mxu1 %vm976_vm12, %v2927_v4 }
 0x67d   :  { %3164 = vmatpush3.bf16.msra.mxu1 %v3161_v63  ;;  %2950 = vmatprep.mubr.msk.f32.mxu1 %vm976_vm12, %v1654_v24  ;;  %v1863_v63 = vld [vmem:[#allocation2 + $0x368] sm:$0x3] }
 0x67e   :  { %3166 = vmatprep.subr.bf16.mxu1 %v3165_v2  ;;  %3189 = vmatprep.subr.bf16.mxu0 %v3169_v9 }
 0x67f   :  { %3191 = vmatpush3.bf16.msra.mxu0 %v3169_v9 }
 0x680   :  { %2951 = vmatmul.mubr.msk.f32.vlgmr.msra.gmra.mrb[48].mxu1 %vm976_vm12, %v2924_v5 }
 0x681   :  { %3168 = vmatpush3.bf16.msra.mxu1 %v3165_v2  ;;  %2953 = vmatprep.mubr.msk.f32.mxu1 %vm976_vm12, %v1664_v7 }
 0x682   :  { %3170 = vmatprep.subr.bf16.mxu1 %v3169_v9  ;;  %2994 = vmatmul.mubr.msk.f32.vlgmr.msra.gmra.mrb[48].mxu0 %vm976_vm12, %v2140_v16 }
 0x683   :  { %3004 = vmatprep.mubr.msk.f32.mxu0 %vm976_vm12, %v2234_v18 }
 0x684   :  { %2954 = vmatmul.mubr.msk.f32.gmra.mrb[50].mxu1 %vm976_vm12, %v2927_v4 }
 0x685   :  { %3172 = vmatpush3.bf16.msra.mxu1 %v3169_v9  ;;  %2964 = vmatprep.mubr.msk.f32.mxu1 %vm976_vm12, %v1866_v10 }
 0x688   :  { %2965 = vmatmul.mubr.msk.f32.vlgmr.msra.gmra.mrb[52].mxu1 %vm976_vm12, %v1867_v13 }
 0x689   :  { %2975 = vmatprep.mubr.msk.f32.mxu1 %vm976_vm12, %v1961_v17 }
 0x74b   :  { %v2938_v23 = vpop.f32.mrb[44].mxu1 }
 0x74c   :  { %v1755_v29 = vpop.f32.mrb[45].mxu1 }
 0x74d   :  { %v3173_v41 = vpack.c.bf16 %v2938_v23, %v1755_v29 }
 0x74f   :  { %v2941_v19 = vpop.f32.mrb[46].mxu1  ;;  %3174 = vmatprep.subr.bf16.mxu1 %v3173_v41  ;;  %3193 = vmatprep.subr.bf16.mxu0 %v3173_v41 }
 0x750   :  { %v1765_v53 = vpop.f32.mrb[47].mxu1  ;;  %3176 = vmatpush3.bf16.msra.mxu1 %v3173_v41  ;;  %3195 = vmatpush3.bf16.msra.mxu0 %v3173_v41 }
 0x751   :  { %v3177_v20 = vpack.c.bf16 %v2941_v19, %v1765_v53 }
 0x753   :  { %v2952_v45 = vpop.f32.mrb[48].mxu1  ;;  %3178 = vmatprep.subr.bf16.mxu1 %v3177_v20  ;;  %3197 = vmatprep.subr.bf16.mxu0 %v3177_v20 }
 0x754   :  { %v1844_v52 = vpop.f32.mrb[49].mxu1  ;;  %3180 = vmatpush3.bf16.msra.mxu1 %v3177_v20  ;;  %3199 = vmatpush3.bf16.msra.mxu0 %v3177_v20 }
 0x755   :  { %v3200_v12 = vpack.c.bf16 %v2952_v45, %v1844_v52  ;;  %3181 = vmatprep.subr.bf16.mxu1 %v3336_v1 }
 0x757   :  { %v2955_v62 = vpop.f32.mrb[50].mxu1  ;;  %2976 = vmatmul.mubr.msk.f32.vlgmr.msra.gmra.mrb[52].mxu1 %vm976_vm12, %v1962_v57  ;;  %3005 = vmatmul.mubr.msk.f32.vlgmr.msra.gmra.mrb[48].mxu0 %vm976_vm12, %v2235_v34 }
 0x758   :  { %3201 = vmatprep.subr.bf16.mxu0 %v3200_v12  ;;  %v1854_v61 = vpop.f32.mrb[51].mxu1  ;;  %3015 = vmatprep.mubr.msk.f32.mxu0 %vm976_vm12, %v2319_v38 }
 0x759   :  { %v3204_v36 = vpack.c.bf16 %v2955_v62, %v1854_v61  ;;  %3203 = vmatpush3.bf16.msra.mxu0 %v3200_v12  ;;  %2982 = vmatprep.mubr.msk.f32.mxu1 %vm3340_vm13, %v3337_v43 }
 0x75b   :  { %3205 = vmatprep.subr.bf16.mxu0 %v3204_v36 }
 0x75d   :  { %3207 = vmatpush3.bf16.msra.mxu0 %v3204_v36 }
 0x75e   :  { %3208 = vmatprep.subr.bf16.mxu0 %v3336_v1  ;;  %v2230_v1 = vpop.permute.xlu1 %2229 }
 0x760   :  { %3016 = vmatmul.mubr.msk.f32.vlgmr.msra.gmra.mrb[48].mxu0 %vm976_vm12, %v2320_v46 }
 0x761   :  { %3022 = vmatprep.mubr.msk.f32.mxu0 %vm3340_vm13, %v3337_v43 }
 0x82a   :  { %v2977_v8 = vpop.f32.mrb[52].mxu1 }
 0x82b   :  { %v3211_v59 = vadd.f32 %v2977_v8, %v1957_v3  ;;  %v2035_v21 = vpop.f32.mrb[53].mxu1 }
 0x82c   :  { %v3212_v6 = vadd.f32 %v2035_v21, %v1952_v51 }
 0x82d   :  { %v2047_v26 = vmax.f32 %v3211_v59, 0.0 }
 0x82e   :  { %v2046_v22 = vmax.f32 %v3212_v6, 0.0 }
 0x82f   :  { %v2054_v14 = vmul.f32 %v2661_v25, %v2047_v26 }
 0x830   :  { %v2053_v27 = vmul.f32 %v2661_v25, %v2046_v22 }
 0x831   :  { %v2058_v60 = vsel %vm976_vm12, %v2054_v14, -inf }
 0x832   :  { %2059 = vmax.xlane.f32.xlu1 %v2058_v60  ;;  %v2055_v37 = vsel %vm976_vm12, %v2053_v27, -inf }
 0x833   :  { %v3017_v50 = vpop.f32.mrb[48].mxu0  ;;  %2056 = vmax.xlane.f32.xlu0 %v2055_v37 }
 0x834   :  { %v3215_v28 = vadd.f32 %v3017_v50, %v2230_v1  ;;  %v2393_v44 = vpop.f32.mrb[49].mxu0 }
 0x835   :  { %v3216_v30 = vadd.f32 %v2393_v44, %v2225_v40 }
 0x836   :  { %v2405_v32 = vmax.f32 %v3215_v28, 0.0 }
 0x837   :  { %v2404_v33 = vmax.f32 %v3216_v30, 0.0 }
 0x838   :  { %v2412_v42 = vmul.f32 %v2669_v31, %v2405_v32 }
 0x839   :  { %v2411_v35 = vmul.f32 %v2669_v31, %v2404_v33 }
 0x83a   :  { %v2416_v0 = vsel %vm976_vm12, %v2412_v42, -inf }
 0x83b   :  { %v2413_v39 = vsel %vm976_vm12, %v2411_v35, -inf }
 0x83c   :  { %2414 = vmax.xlane.f32.xlu0 %v2413_v39 }
 0x840   :  { %2417 = vmax.xlane.f32.xlu0 %v2416_v0 }
 0x8bf   :  { %v2060_v47 = vpop.xlane.xlu1 %2059 }
 0x8c0   :  { %v2057_v48 = vpop.xlane.xlu0 %2056 }
 0x8c1   :  { %v3182_v49 = vpack.c.bf16 %v2060_v47, %v2057_v48 }
 0x8c3   :  { %3183 = vmatpush3.bf16.msra.mxu1 %v3182_v49 }
 0x8c6   :  { %2983 = vmatmul.mubr.msk.f32.vlgmr.msra.gmra.mrb[54].mxu1 %vm2062_vm14, %v2061_v54 }
 0x8c9   :  { %v2415_v55 = vpop.xlane.xlu0 %2414 }
 0x8cd   :  { %v2418_v56 = vpop.xlane.xlu0 %2417 }
 0x8ce   :  { %v3209_v58 = vpack.c.bf16 %v2418_v56, %v2415_v55 }
 0x8d0   :  { %3210 = vmatpush3.bf16.msra.mxu0 %v3209_v58 }
 0x8d3   :  { %3023 = vmatmul.mubr.msk.f32.vlgmr.msra.gmra.mrb[50].mxu0 %vm2062_vm14, %v2419_v15 }
 0x999   :  { %v2132_v5 = vpop.f32.mrb[54].mxu1 }
 0x99a   :  { %v2984_v24 = vpop.f32.mrb[55].mxu1  ;;  %v2136_v2 = vadd.f32 %v2132_v5, %v1863_v63 }
 0x9a6   :  { %v2489_v4 = vpop.f32.mrb[50].mxu0 }
 0x9a7   :  { %v2493_v43 = vadd.f32 %v2489_v4, %v2136_v2  ;;  %v3024_v7 = vpop.f32.mrb[51].mxu0 }
 0x9a9   :  { %2495 = vst.msk [vmem:[%s3912_s5] sm:$0x3] %vm2494_vm15, %v2493_v43 }
 0x9aa   :  { %2500 = vsyncpa [#allocation3], 1 }

</bundles_post_ra>
